<compile_context>
chip_gen: v5e
topology: v5e:2x2
jax: 0.10.0
libtpu: 0.0.40
codegen_flags: <defaults>
</compile_context>

<pallas_src>
import functools

import jax
import jax.numpy as jnp
from jax.experimental import pallas as pl
from jax.experimental.pallas import tpu as pltpu

LANE = 128


def _round_up(n, m):
    return ((n + m - 1) // m) * m


# ----------------------------------------------------------------------------
# Kernel: one batch tile of the fused Sequential forward.
# ----------------------------------------------------------------------------
def sequential_kernel(x_ref, w1_ref, b1_ref, w2_ref, b2_ref, w3_ref, b3_ref, o_ref):
    # x arrives f32; cast to bf16 in-kernel (cheap VPU work, avoids a wrapper
    # XLA cast op that would add a full extra HBM read+write pass over x).
    x = x_ref[...].astype(jnp.bfloat16)                               # (TB, d_in)
    # Linear 1 (+bias) -> ReLU, f32 accumulation on the MXU
    h = jnp.dot(x, w1_ref[...], preferred_element_type=jnp.float32) + b1_ref[...]
    h = jnp.maximum(h, 0.0)
    # Linear 2 (+bias) -> Tanh
    h = jnp.dot(h.astype(jnp.bfloat16), w2_ref[...],
                preferred_element_type=jnp.float32) + b2_ref[...]
    h = jnp.tanh(h)
    # Linear 3 (+bias)
    h = jnp.dot(h.astype(jnp.bfloat16), w3_ref[...],
                preferred_element_type=jnp.float32) + b3_ref[...]
    o_ref[...] = h.astype(o_ref.dtype)                                # (TB, d_out) f32


# ----------------------------------------------------------------------------
# One-time parameter prep (hoisted out of the per-call path).
# ----------------------------------------------------------------------------
def prepare_params(params):
    """Zero-pad hidden dims to a multiple of 128 lanes and cast matmul operands
    to bf16 (biases stay f32). Exact through ReLU/Tanh because padded weight
    rows/cols and bias entries are zero. Call ONCE at init."""
    w1, b1, w2, b2, w3, b3 = params
    h1, h2 = w1.shape[1], w2.shape[1]
    h1p, h2p = _round_up(h1, LANE), _round_up(h2, LANE)

    w1p = jnp.pad(w1, ((0, 0), (0, h1p - h1))).astype(jnp.bfloat16)
    b1p = jnp.pad(b1, ((0, 0), (0, h1p - h1))).astype(jnp.float32)
    w2p = jnp.pad(w2, ((0, h1p - h1), (0, h2p - h2))).astype(jnp.bfloat16)
    b2p = jnp.pad(b2, ((0, 0), (0, h2p - h2))).astype(jnp.float32)
    w3p = jnp.pad(w3, ((0, h2p - h2), (0, 0))).astype(jnp.bfloat16)
    b3p = b3.astype(jnp.float32)
    return (w1p, b1p, w2p, b2p, w3p, b3p)


# ----------------------------------------------------------------------------
# Tile sizing: one big tile on single-TC chips; an even tile count on 2-TC chips.
# ----------------------------------------------------------------------------
def _tensorcores_per_chip():
    try:
        kind = jax.devices()[0].device_kind.lower()
    except Exception:
        return 1
    # 2 TCs (megacore / dual-TC) generations; v5e/v6e are single-TC.
    return 2 if any(t in kind for t in ("v7", "v4", "v5p")) else 1


def _choose_block_b(B, max_tile=4096):
    n_tc = _tensorcores_per_chip()
    if n_tc <= 1:
        # Serial grid on one TC: fewer, bigger tiles win at this problem size.
        return min(_round_up(B, 8), max_tile)
    # Two TCs: even number of tiles so both cores get work.
    tile = _round_up(pl.cdiv(B, 2 * pl.cdiv(pl.cdiv(B, 2), max_tile)), 8)
    return min(tile, max_tile)


# ----------------------------------------------------------------------------
# Wrapper
# ----------------------------------------------------------------------------
def sequential_forward(x, prepared_params, *, block_b=None):
    """Fused forward pass of the Sequential module chain.

    x: [B, d_in] float32 (NOT pre-cast, NOT pre-padded)
    prepared_params: output of prepare_params(...)
    """
    w1, b1, w2, b2, w3, b3 = prepared_params
    B, d_in = x.shape
    d_out = w3.shape[1]
    h1p, h2p = w1.shape[1], w2.shape[1]

    if block_b is None:
        block_b = _choose_block_b(B)
    block_b = min(block_b, _round_up(B, 8)) if block_b > B else block_b
    nb = pl.cdiv(B, block_b)   # ragged last tile handled by Pallas (masked stores)

    # Weights/biases: full-array blocks whose block index never changes -> they
    # stay resident in VMEM across all batch tiles (no re-DMA per grid step).
    def resident(a):
        return pl.BlockSpec(a.shape, lambda i: (0, 0))

    flops = 2 * B * (d_in * h1p + h1p * h2p + h2p * d_out)
    bytes_accessed = (
        B * d_in * 4            # f32 x read
        + B * d_out * 4         # f32 output write
        + sum(int(a.size) * a.dtype.itemsize for a in (w1, b1, w2, b2, w3, b3))
    )
    cost = pl.CostEstimate(flops=flops,
                           transcendentals=B * h2p,
                           bytes_accessed=bytes_accessed)

    return pl.pallas_call(
        sequential_kernel,
        out_shape=jax.ShapeDtypeStruct((B, d_out), jnp.float32),
        grid=(nb,),
        in_specs=[
            pl.BlockSpec((block_b, d_in), lambda i: (i, 0)),   # streamed x tile
            resident(w1), resident(b1),
            resident(w2), resident(b2),
            resident(w3), resident(b3),
        ],
        out_specs=pl.BlockSpec((block_b, d_out), lambda i: (i, 0)),
        compiler_params=pltpu.CompilerParams(
            dimension_semantics=("parallel",),
        ),
        cost_estimate=cost,
    )(x, w1, b1, w2, b2, w3, b3)


# ----------------------------------------------------------------------------
# References & init
# ----------------------------------------------------------------------------
def sequential_forward_ref(x, params):
    """Pure-JAX f32 reference (mirrors Sequential.forward semantics)."""
    w1, b1, w2, b2, w3, b3 = params
    y = x
    y = jnp.maximum(y @ w1 + b1, 0.0)   # Linear + ReLU
    y = jnp.tanh(y @ w2 + b2)           # Linear + Tanh
    y = y @ w3 + b3                     # Linear
    return y


def sequential_forward_ref_bf16(x, params):
    """Same math as the kernel (bf16 matmul operands, f32 accumulation)."""
    w1, b1, w2, b2, w3, b3 = params
    bf = jnp.bfloat16
    y = jnp.dot(x.astype(bf), w1.astype(bf), preferred_element_type=jnp.float32) + b1
    y = jnp.maximum(y, 0.0)
    y = jnp.dot(y.astype(bf), w2.astype(bf), preferred_element_type=jnp.float32) + b2
    y = jnp.tanh(y)
    y = jnp.dot(y.astype(bf), w3.astype(bf), preferred_element_type=jnp.float32) + b3
    return y


def init_params(key, d_in=32, h1=64, h2=32, d_out=8):
    """Deterministic parameter init (uniform fan-in scaling, like the framework's Linear)."""
    ks = jax.random.split(key, 6)

    def lin(kw, kb, fan_in, fan_out):
        bound = 1.0 / jnp.sqrt(fan_in)
        w = jax.random.uniform(kw, (fan_in, fan_out), jnp.float32, -bound, bound)
        b = jax.random.uniform(kb, (1, fan_out), jnp.float32, -bound, bound)
        return w, b

    w1, b1 = lin(ks[0], ks[1], d_in, h1)
    w2, b2 = lin(ks[2], ks[3], h1, h2)
    w3, b3 = lin(ks[4], ks[5], h2, d_out)
    return (w1, b1, w2, b2, w3, b3)


if __name__ == "__main__":
    key = jax.random.PRNGKey(0)
    k_x, k_p = jax.random.split(key)

    B, D_IN, H1, H2, D_OUT = 1000, 32, 64, 32, 8   # B deliberately not tile-aligned
    x = jax.random.normal(k_x, (B, D_IN), dtype=jnp.float32)
    params = init_params(k_p, d_in=D_IN, h1=H1, h2=H2, d_out=D_OUT)

    # Parameter prep happens ONCE; the jitted forward closes over prepared params.
    prepped = prepare_params(params)
    forward = jax.jit(functools.partial(sequential_forward, prepared_params=prepped))

    out = forward(x)
    out = jax.block_until_ready(out)

    ref_f32 = sequential_forward_ref(x, params)
    assert out.shape == ref_f32.shape, (out.shape, ref_f32.shape)
    # Loose check vs full-f32 math (bf16 operands introduce ~1e-2 level error).
    assert jnp.allclose(out, ref_f32, atol=5e-2, rtol=5e-2), "mismatch vs f32 reference"
    # Tight check vs precision-matched reference (bf16 operands, f32 accumulation).
    ref_bf = sequential_forward_ref_bf16(x, params)
    assert jnp.allclose(out, ref_bf, atol=1e-2, rtol=1e-2), "mismatch vs bf16-matched reference"

    print("KERNEL_OK")
</pallas_src>

<mosaic_0001>
module attributes {stable_mosaic.version = 11 : i64} {
  func.func @sequential_kernel(%arg0: i32, %arg1: memref<1000x32xf32, #tpu.memory_space<vmem>>, %arg2: memref<32x128xbf16, #tpu.memory_space<vmem>>, %arg3: memref<1x128xf32, #tpu.memory_space<vmem>>, %arg4: memref<128x128xbf16, #tpu.memory_space<vmem>>, %arg5: memref<1x128xf32, #tpu.memory_space<vmem>>, %arg6: memref<128x8xbf16, #tpu.memory_space<vmem>>, %arg7: memref<1x8xf32, #tpu.memory_space<vmem>>, %arg8: memref<1000x8xf32, #tpu.memory_space<vmem>>) attributes {dimension_semantics = [#tpu.dimension_semantics<parallel>], iteration_bounds = array<i64: 1>, scalar_prefetch = 0 : i64, scratch_operands = 0 : i64, tpu.core_type = #tpu.core_type<tc>, window_params = [{transform_indices = @transform_0, window_bounds = array<i64: 1000, 32>}, {pipeline_mode = #tpu.pipeline_mode<synchronous>, transform_indices = @transform_1, window_bounds = array<i64: 32, 128>}, {pipeline_mode = #tpu.pipeline_mode<synchronous>, transform_indices = @transform_2, window_bounds = array<i64: 1, 128>}, {pipeline_mode = #tpu.pipeline_mode<synchronous>, transform_indices = @transform_3, window_bounds = array<i64: 128, 128>}, {pipeline_mode = #tpu.pipeline_mode<synchronous>, transform_indices = @transform_4, window_bounds = array<i64: 1, 128>}, {pipeline_mode = #tpu.pipeline_mode<synchronous>, transform_indices = @transform_5, window_bounds = array<i64: 128, 8>}, {pipeline_mode = #tpu.pipeline_mode<synchronous>, transform_indices = @transform_6, window_bounds = array<i64: 1, 8>}, {transform_indices = @transform_7, window_bounds = array<i64: 1000, 8>}]} {
    %c0 = arith.constant 0 : index
    %c0_0 = arith.constant 0 : index
    %0 = vector.load %arg1[%c0, %c0_0] : memref<1000x32xf32, #tpu.memory_space<vmem>>, vector<1000x32xf32>
    %1 = arith.truncf %0 : vector<1000x32xf32> to vector<1000x32xbf16>
    %c0_1 = arith.constant 0 : index
    %c0_2 = arith.constant 0 : index
    %2 = vector.load %arg2[%c0_1, %c0_2] : memref<32x128xbf16, #tpu.memory_space<vmem>>, vector<32x128xbf16>
    %cst = arith.constant dense<0.000000e+00> : vector<1000x128xf32>
    %3 = tpu.matmul %1, %2, %cst {dimension_numbers = #tpu.dot_dimension_numbers<[1], [0], [0], [1], [0, 0, 1, 1], [], []>} : vector<1000x32xbf16>, vector<32x128xbf16>, vector<1000x128xf32> -> vector<1000x128xf32>
    %c0_3 = arith.constant 0 : index
    %c0_4 = arith.constant 0 : index
    %4 = vector.load %arg3[%c0_3, %c0_4] : memref<1x128xf32, #tpu.memory_space<vmem>>, vector<1x128xf32>
    %5 = vector.broadcast %4 : vector<1x128xf32> to vector<1000x128xf32>
    %6 = arith.addf %3, %5 : vector<1000x128xf32>
    %cst_5 = arith.constant 0.000000e+00 : f32
    %7 = vector.broadcast %cst_5 : f32 to vector<1000x128xf32>
    %8 = arith.maximumf %6, %7 : vector<1000x128xf32>
    %9 = arith.truncf %8 : vector<1000x128xf32> to vector<1000x128xbf16>
    %c0_6 = arith.constant 0 : index
    %c0_7 = arith.constant 0 : index
    %10 = vector.load %arg4[%c0_6, %c0_7] : memref<128x128xbf16, #tpu.memory_space<vmem>>, vector<128x128xbf16>
    %cst_8 = arith.constant dense<0.000000e+00> : vector<1000x128xf32>
    %11 = tpu.matmul %9, %10, %cst_8 {dimension_numbers = #tpu.dot_dimension_numbers<[1], [0], [0], [1], [0, 0, 1, 1], [], []>} : vector<1000x128xbf16>, vector<128x128xbf16>, vector<1000x128xf32> -> vector<1000x128xf32>
    %c0_9 = arith.constant 0 : index
    %c0_10 = arith.constant 0 : index
    %12 = vector.load %arg5[%c0_9, %c0_10] : memref<1x128xf32, #tpu.memory_space<vmem>>, vector<1x128xf32>
    %13 = vector.broadcast %12 : vector<1x128xf32> to vector<1000x128xf32>
    %14 = arith.addf %11, %13 : vector<1000x128xf32>
    %15 = math.tanh %14 : vector<1000x128xf32>
    %16 = arith.truncf %15 : vector<1000x128xf32> to vector<1000x128xbf16>
    %c0_11 = arith.constant 0 : index
    %c0_12 = arith.constant 0 : index
    %17 = vector.load %arg6[%c0_11, %c0_12] : memref<128x8xbf16, #tpu.memory_space<vmem>>, vector<128x8xbf16>
    %cst_13 = arith.constant dense<0.000000e+00> : vector<1000x8xf32>
    %18 = tpu.matmul %16, %17, %cst_13 {dimension_numbers = #tpu.dot_dimension_numbers<[1], [0], [0], [1], [0, 0, 1, 1], [], []>} : vector<1000x128xbf16>, vector<128x8xbf16>, vector<1000x8xf32> -> vector<1000x8xf32>
    %c0_14 = arith.constant 0 : index
    %c0_15 = arith.constant 0 : index
    %19 = vector.load %arg7[%c0_14, %c0_15] : memref<1x8xf32, #tpu.memory_space<vmem>>, vector<1x8xf32>
    %20 = vector.broadcast %19 : vector<1x8xf32> to vector<1000x8xf32>
    %21 = arith.addf %18, %20 : vector<1000x8xf32>
    %c0_16 = arith.constant 0 : index
    %c0_17 = arith.constant 0 : index
    %22 = vector.load %arg8[%c0_16, %c0_17] : memref<1000x8xf32, #tpu.memory_space<vmem>>, vector<1000x8xf32>
    tpu.vector_store %arg8[%c0_16, %c0_17], %21 {strides = array<i32>} : memref<1000x8xf32, #tpu.memory_space<vmem>>, vector<1000x8xf32>,
    return
  }
  func.func @transform_0(%arg0: i32) -> (i32, i32) {
    %c0_i32 = arith.constant 0 : i32
    %c0_i32_0 = arith.constant 0 : i32
    return %arg0, %c0_i32 : i32, i32
  }
  func.func @transform_1(%arg0: i32) -> (i32, i32) {
    %c0_i32 = arith.constant 0 : i32
    %c0_i32_0 = arith.constant 0 : i32
    %c0_i32_1 = arith.constant 0 : i32
    return %c0_i32, %c0_i32_0 : i32, i32
  }
  func.func @transform_2(%arg0: i32) -> (i32, i32) {
    %c0_i32 = arith.constant 0 : i32
    %c0_i32_0 = arith.constant 0 : i32
    %c0_i32_1 = arith.constant 0 : i32
    return %c0_i32, %c0_i32_0 : i32, i32
  }
  func.func @transform_3(%arg0: i32) -> (i32, i32) {
    %c0_i32 = arith.constant 0 : i32
    %c0_i32_0 = arith.constant 0 : i32
    %c0_i32_1 = arith.constant 0 : i32
    return %c0_i32, %c0_i32_0 : i32, i32
  }
  func.func @transform_4(%arg0: i32) -> (i32, i32) {
    %c0_i32 = arith.constant 0 : i32
    %c0_i32_0 = arith.constant 0 : i32
    %c0_i32_1 = arith.constant 0 : i32
    return %c0_i32, %c0_i32_0 : i32, i32
  }
  func.func @transform_5(%arg0: i32) -> (i32, i32) {
    %c0_i32 = arith.constant 0 : i32
    %c0_i32_0 = arith.constant 0 : i32
    %c0_i32_1 = arith.constant 0 : i32
    return %c0_i32, %c0_i32_0 : i32, i32
  }
  func.func @transform_6(%arg0: i32) -> (i32, i32) {
    %c0_i32 = arith.constant 0 : i32
    %c0_i32_0 = arith.constant 0 : i32
    %c0_i32_1 = arith.constant 0 : i32
    return %c0_i32, %c0_i32_0 : i32, i32
  }
  func.func @transform_7(%arg0: i32) -> (i32, i32) {
    %c0_i32 = arith.constant 0 : i32
    %c0_i32_0 = arith.constant 0 : i32
    return %arg0, %c0_i32 : i32, i32
  }
}

</mosaic_0001>

<bundles_post_ra>
// kernel: sequential_forward.1
= control target key start
LH: loop header
LB: loop body
LE: loop exit
PB: predicated region body
PF: predicated region fallthrough
CT: control target
= control target key end

     0   :  { %vm235_vm0 = vcmask 261120   ;;  %vm1906_vm1 = vcmask 64512   ;;  %s4109_s1 = inlined_call_operand.vmem [shape: bf16[32,128], index: 1, kind: input, shape index: {}]   ;;  %s4110_s0 = inlined_call_operand.vmem [shape: f32[1000,32], index: 0, kind: input, shape index: {}]   ;;  %s4111_s2 = inlined_call_operand.vmem [shape: f32[1,128], index: 2, kind: input, shape index: {}]   ;;  %s4112_s3 = inlined_call_operand.vmem [shape: bf16[128,128], index: 3, kind: input, shape index: {}]   ;;  %s4113_s4 = inlined_call_operand.vmem [shape: f32[1,128], index: 4, kind: input, shape index: {}]   ;;  %s4114_s5 = inlined_call_operand.vmem [shape: bf16[128,8], index: 5, kind: input, shape index: {}]   ;;  %s4115_s6 = inlined_call_operand.vmem [shape: f32[1,8], index: 6, kind: input, shape index: {}]   ;;  %s4116_s7 = inlined_call_operand.vmem [shape: f32[1000,8], index: 7, kind: output, shape index: {}]  }
   0x1   :  { %v2172_v0 = vld [vmem:[%s4109_s1 + $0x8] sm:$0xff]  ;;  %v2171_v1 = vld [vmem:[%s4109_s1] sm:$0xff]  ;;  %v29_v5 = vld [vmem:[%s4110_s0 + $0x10] sm:$0xff] }
   0x2   :  { %431 = vmatpush.bf16.msra.mxu0 %v2172_v0  ;;  %v27_v2 = vld [vmem:[%s4110_s0] sm:$0xff]  ;;  %v28_v3 = vld [vmem:[%s4110_s0 + $0x8] sm:$0xff]  ;;  %2189 = vmatpush.bf16.msra.mxu3 %v2172_v0  ;;  %v30_v6 = vld [vmem:[%s4110_s0 + $0x18] sm:$0xff] }
   0x3   :  { %v152_v4 = vpack.c.bf16 %v28_v3, %v27_v2  ;;  %v153_v7 = vpack.c.bf16 %v30_v6, %v29_v5  ;;  %v31_v8 = vld [vmem:[%s4110_s0 + $0x20] sm:$0xff]  ;;  %v32_v9 = vld [vmem:[%s4110_s0 + $0x28] sm:$0xff]  ;;  %v33_v11 = vld [vmem:[%s4110_s0 + $0x30] sm:$0xff] }
   0x4   :  { %v154_v10 = vpack.c.bf16 %v32_v9, %v31_v8  ;;  %v34_v12 = vld [vmem:[%s4110_s0 + $0x38] sm:$0xff]  ;;  %v35_v14 = vld [vmem:[%s4110_s0 + $0x40] sm:$0xff]  ;;  %v36_v15 = vld [vmem:[%s4110_s0 + $0x48] sm:$0xff] }
   0x5   :  { %v155_v13 = vpack.c.bf16 %v34_v12, %v33_v11  ;;  %v156_v16 = vpack.c.bf16 %v36_v15, %v35_v14  ;;  %v2180_v17 = vld [vmem:[%s4112_s3 + $0x38] sm:$0xff]  ;;  %v37_v18 = vld [vmem:[%s4110_s0 + $0x50] sm:$0xff]  ;;  %v2178_v22 = vld [vmem:[%s4112_s3 + $0x28] sm:$0xff] }
   0x6   :  { %432 = vmatpush.bf16.msra.mxu0 %v2171_v1  ;;  %2190 = vmatpush.bf16.msra.mxu3 %v2171_v1  ;;  %v38_v19 = vld [vmem:[%s4110_s0 + $0x58] sm:$0xff]  ;;  %v2179_v21 = vld [vmem:[%s4112_s3 + $0x30] sm:$0xff]  ;;  %v2177_v23 = vld [vmem:[%s4112_s3 + $0x20] sm:$0xff] }
   0x7   :  { %1004 = vmatpush.bf16.msra.mxu1 %v2180_v17  ;;  %v157_v20 = vpack.c.bf16 %v38_v19, %v37_v18  ;;  %v39_v24 = vld [vmem:[%s4110_s0 + $0x60] sm:$0xff]  ;;  %v40_v25 = vld [vmem:[%s4110_s0 + $0x68] sm:$0xff]  ;;  %v2176_v26 = vld [vmem:[%s4112_s3 + $0x18] sm:$0xff] }
   0x8   :  { %v158_v27 = vpack.c.bf16 %v40_v25, %v39_v24  ;;  %v2175_v28 = vld [vmem:[%s4112_s3 + $0x10] sm:$0xff]  ;;  %v2174_v29 = vld [vmem:[%s4112_s3 + $0x8] sm:$0xff]  ;;  %v2173_v30 = vld [vmem:[%s4112_s3] sm:$0xff] }
   0x9   :  { %2044 = vmatmul.msk.bf16.vlgmr.msra.gmra.mxu0 %vm235_vm0, %v152_v4  ;;  %v41_v31 = vld [vmem:[%s4110_s0 + $0x70] sm:$0xff]  ;;  %v42_v32 = vld [vmem:[%s4110_s0 + $0x78] sm:$0xff]  ;;  %v43_v34 = vld [vmem:[%s4110_s0 + $0x80] sm:$0xff] }
   0xa   :  { %2191 = vmatpush.bf16.msrb.mxu3 %v2180_v17  ;;  %v159_v33 = vpack.c.bf16 %v42_v32, %v41_v31  ;;  %v44_v35 = vld [vmem:[%s4110_s0 + $0x88] sm:$0xff]  ;;  %v2610_v38 = vld [vmem:[%s4111_s2] ss:$0 sm:$0xff]  ;;  %v45_v44 = vld [vmem:[%s4110_s0 + $0x90] sm:$0xff] }
   0xb   :  { %1005 = vmatpush.bf16.msra.mxu1 %v2179_v21  ;;  %v160_v36 = vpack.c.bf16 %v44_v35, %v43_v34  ;;  %v46_v45 = vld [vmem:[%s4110_s0 + $0x98] sm:$0xff]  ;;  %v47_v54 = vld [vmem:[%s4110_s0 + $0xa0] sm:$0xff]  ;;  %v48_v55 = vld [vmem:[%s4110_s0 + $0xa8] sm:$0xff] }
   0xc   :  { %v161_v47 = vpack.c.bf16 %v46_v45, %v45_v44  ;;  %v162_v57 = vpack.c.bf16 %v48_v55, %v47_v54  ;;  %v49_v0 = vld [vmem:[%s4110_s0 + $0xb0] sm:$0xff]  ;;  %v50_v1 = vld [vmem:[%s4110_s0 + $0xb8] sm:$0xff]  ;;  %v52_v11 = vld [vmem:[%s4110_s0 + $0xc8] sm:$0xff] }
   0xd   :  { %v163_v3 = vpack.c.bf16 %v50_v1, %v49_v0  ;;  %v56_v31 = vld [vmem:[%s4110_s0 + $0xe8] sm:$0xff]  ;;  %v2188_v34 = vld [vmem:[%s4114_s5 + $0x38] sm:$0xff]  ;;  %v2185_v44 = vld [vmem:[%s4114_s5 + $0x20] sm:$0xff] }
   0xe   :  { %2192 = vmatpush.bf16.msrb.mxu3 %v2179_v21  ;;  %v54_v21 = vld [vmem:[%s4110_s0 + $0xd8] sm:$0xff]  ;;  %1583 = vmatpush.bf16.msra.mxu2 %v2188_v34  ;;  %v57_v45 = vld [vmem:[%s4110_s0 + $0xf0] sm:$0xff] }
   0xf   :  { %1006 = vmatpush.bf16.msra.mxu1 %v2178_v22 }
  0x12   :  { %2193 = vmatpush.bf16.msrb.mxu3 %v2178_v22 }
  0x13   :  { %1007 = vmatpush.bf16.msra.mxu1 %v2177_v23 }
  0x16   :  { %2194 = vmatpush.bf16.msrb.mxu3 %v2177_v23 }
  0x17   :  { %1008 = vmatpush.bf16.msra.mxu1 %v2176_v26 }
  0x19   :  { %2045 = vmatmul.msk.bf16.gmra.mxu0 %vm235_vm0, %v153_v7 }
  0x1a   :  { %2195 = vmatpush.bf16.msrb.mxu3 %v2176_v26 }
  0x1b   :  { %1009 = vmatpush.bf16.msra.mxu1 %v2175_v28 }
  0x1e   :  { %2196 = vmatpush.bf16.msrb.mxu3 %v2175_v28 }
  0x1f   :  { %1010 = vmatpush.bf16.msra.mxu1 %v2174_v29 }
  0x22   :  { %2197 = vmatpush.bf16.msrb.mxu3 %v2174_v29 }
  0x23   :  { %1011 = vmatpush.bf16.msra.mxu1 %v2173_v30 }
  0x26   :  { %2198 = vmatpush.bf16.msrb.mxu3 %v2173_v30  ;;  %v55_v30 = vld [vmem:[%s4110_s0 + $0xe0] sm:$0xff] }
  0x29   :  { %2046 = vmatmul.msk.bf16.gmra.mxu0 %vm235_vm0, %v154_v10  ;;  %v51_v10 = vld [vmem:[%s4110_s0 + $0xc0] sm:$0xff] }
  0x39   :  { %2047 = vmatmul.msk.bf16.gmra.mxu0 %vm235_vm0, %v155_v13  ;;  %v164_v13 = vpack.c.bf16 %v52_v11, %v51_v10 }
  0x49   :  { %2048 = vmatmul.msk.bf16.gmra.mxu0 %vm235_vm0, %v156_v16 }
  0x59   :  { %2049 = vmatmul.msk.bf16.gmra.mxu0 %vm235_vm0, %v157_v20  ;;  %v53_v20 = vld [vmem:[%s4110_s0 + $0xd0] sm:$0xff] }
  0x5a   :  { %v165_v23 = vpack.c.bf16 %v54_v21, %v53_v20 }
  0x69   :  { %2050 = vmatmul.msk.bf16.gmra.mxu0 %vm235_vm0, %v158_v27 }
  0x79   :  { %2051 = vmatmul.msk.bf16.gmra.mxu0 %vm235_vm0, %v159_v33  ;;  %v166_v33 = vpack.c.bf16 %v56_v31, %v55_v30 }
  0x86   :  { %v434_v37 = vpop.f32.mrf.mxu0 }
  0x87   :  { %v435_v39 = vadd.f32 %v2610_v38, %v434_v37 }
  0x89   :  { %2052 = vmatmul.msk.bf16.gmra.mxu0 %vm235_vm0, %v160_v36  ;;  %v748_v42 = vmax.f32 %v435_v39, 0.0  ;;  %v2187_v36 = vld [vmem:[%s4114_s5 + $0x30] sm:$0xff]  ;;  %v2186_v39 = vld [vmem:[%s4114_s5 + $0x28] sm:$0xff] }
  0x8a   :  { %1584 = vmatpush.bf16.msra.mxu2 %v2187_v36 }
  0x8e   :  { %v436_v40 = vpop.f32.mrf.mxu0  ;;  %1585 = vmatpush.bf16.msra.mxu2 %v2186_v39 }
  0x8f   :  { %v437_v41 = vadd.f32 %v2610_v38, %v436_v40 }
  0x91   :  { %v749_v43 = vmax.f32 %v437_v41, 0.0 }
  0x92   :  { %1586 = vmatpush.bf16.msra.mxu2 %v2185_v44 }
  0x93   :  { %v873_v46 = vpack.c.bf16 %v749_v43, %v748_v42 }
  0x95   :  { %1012 = vmatmul.bf16.vlgmr.msra.gmra.mxu1 %v873_v46  ;;  %v58_v46 = vld [vmem:[%s4110_s0 + $0xf8] sm:$0xff] }
  0x96   :  { %v439_v48 = vpop.f32.mrf.mxu0 }
  0x97   :  { %v440_v49 = vadd.f32 %v2610_v38, %v439_v48  ;;  %v167_v48 = vpack.c.bf16 %v58_v46, %v57_v45 }
  0x99   :  { %2053 = vmatmul.msk.bf16.gmra.mxu0 %vm235_vm0, %v161_v47  ;;  %v750_v52 = vmax.f32 %v440_v49, 0.0  ;;  %v2184_v49 = vld [vmem:[%s4114_s5 + $0x18] sm:$0xff] }
  0x9a   :  { %1587 = vmatpush.bf16.msra.mxu2 %v2184_v49 }
  0x9e   :  { %v441_v50 = vpop.f32.mrf.mxu0 }
  0x9f   :  { %v442_v51 = vadd.f32 %v2610_v38, %v441_v50 }
  0xa1   :  { %v751_v53 = vmax.f32 %v442_v51, 0.0  ;;  %v2183_v51 = vld [vmem:[%s4114_s5 + $0x10] sm:$0xff] }
  0xa2   :  { %1588 = vmatpush.bf16.msra.mxu2 %v2183_v51 }
  0xa3   :  { %v874_v56 = vpack.c.bf16 %v751_v53, %v750_v52  ;;  %v2182_v53 = vld [vmem:[%s4114_s5 + $0x8] sm:$0xff] }
  0xa5   :  { %1017 = vmatmul.bf16.gmra.mxu1 %v874_v56 }
  0xa6   :  { %v444_v58 = vpop.f32.mrf.mxu0  ;;  %1589 = vmatpush.bf16.msra.mxu2 %v2182_v53 }
  0xa7   :  { %v445_v59 = vadd.f32 %v2610_v38, %v444_v58  ;;  %v2181_v58 = vld [vmem:[%s4114_s5] sm:$0xff] }
  0xa9   :  { %2054 = vmatmul.msk.bf16.gmra.mxu0 %vm235_vm0, %v162_v57  ;;  %v752_v62 = vmax.f32 %v445_v59, 0.0  ;;  %v59_v59 = vld [vmem:[%s4110_s0 + $0x100] sm:$0xff] }
  0xaa   :  { %1590 = vmatpush.bf16.msra.mxu2 %v2181_v58  ;;  %v68_v58 = vld [vmem:[%s4110_s0 + $0x148] sm:$0xff] }
  0xae   :  { %v446_v60 = vpop.f32.mrf.mxu0 }
  0xaf   :  { %v447_v61 = vadd.f32 %v2610_v38, %v446_v60  ;;  %v60_v60 = vld [vmem:[%s4110_s0 + $0x108] sm:$0xff] }
  0xb1   :  { %v753_v63 = vmax.f32 %v447_v61, 0.0 }
  0xb3   :  { %v875_v2 = vpack.c.bf16 %v753_v63, %v752_v62  ;;  %v168_v62 = vpack.c.bf16 %v60_v60, %v59_v59 }
  0xb5   :  { %1022 = vmatmul.bf16.gmra.mxu1 %v875_v2 }
  0xb6   :  { %v449_v4 = vpop.f32.mrf.mxu0 }
  0xb7   :  { %v450_v5 = vadd.f32 %v2610_v38, %v449_v4 }
  0xb9   :  { %2055 = vmatmul.msk.bf16.gmra.mxu0 %vm235_vm0, %v163_v3  ;;  %v754_v8 = vmax.f32 %v450_v5, 0.0 }
  0xbe   :  { %v451_v6 = vpop.f32.mrf.mxu0 }
  0xbf   :  { %v452_v7 = vadd.f32 %v2610_v38, %v451_v6  ;;  %v61_v6 = vld [vmem:[%s4110_s0 + $0x110] sm:$0xff] }
  0xc1   :  { %v755_v9 = vmax.f32 %v452_v7, 0.0  ;;  %v62_v7 = vld [vmem:[%s4110_s0 + $0x118] sm:$0xff] }
  0xc2   :  { %v169_v10 = vpack.c.bf16 %v62_v7, %v61_v6 }
  0xc3   :  { %v876_v12 = vpack.c.bf16 %v755_v9, %v754_v8  ;;  %v2720_v9 = vld [vmem:[%s4113_s4] ss:$0 sm:$0xff] }
  0xc5   :  { %1027 = vmatmul.bf16.gmra.mxu1 %v876_v12 }
  0xc6   :  { %v454_v14 = vpop.f32.mrf.mxu0 }
  0xc7   :  { %v455_v15 = vadd.f32 %v2610_v38, %v454_v14 }
  0xc9   :  { %2056 = vmatmul.msk.bf16.gmra.mxu0 %vm235_vm0, %v164_v13  ;;  %v756_v18 = vmax.f32 %v455_v15, 0.0 }
  0xce   :  { %v456_v16 = vpop.f32.mrf.mxu0 }
  0xcf   :  { %v457_v17 = vadd.f32 %v2610_v38, %v456_v16 }
  0xd1   :  { %v757_v19 = vmax.f32 %v457_v17, 0.0 }
  0xd3   :  { %v877_v22 = vpack.c.bf16 %v757_v19, %v756_v18 }
  0xd5   :  { %1032 = vmatmul.bf16.gmra.mxu1 %v877_v22  ;;  %v63_v22 = vld [vmem:[%s4110_s0 + $0x120] sm:$0xff] }
  0xd6   :  { %v459_v24 = vpop.f32.mrf.mxu0 }
  0xd7   :  { %v460_v25 = vadd.f32 %v2610_v38, %v459_v24 }
  0xd9   :  { %2057 = vmatmul.msk.bf16.gmra.mxu0 %vm235_vm0, %v165_v23  ;;  %v758_v28 = vmax.f32 %v460_v25, 0.0  ;;  %v64_v23 = vld [vmem:[%s4110_s0 + $0x128] sm:$0xff] }
  0xde   :  { %v461_v26 = vpop.f32.mrf.mxu0 }
  0xdf   :  { %v462_v27 = vadd.f32 %v2610_v38, %v461_v26 }
  0xe1   :  { %v759_v29 = vmax.f32 %v462_v27, 0.0  ;;  %v170_v27 = vpack.c.bf16 %v64_v23, %v63_v22 }
  0xe3   :  { %v878_v32 = vpack.c.bf16 %v759_v29, %v758_v28 }
  0xe5   :  { %1037 = vmatmul.bf16.gmra.mxu1 %v878_v32 }
  0xe6   :  { %v464_v35 = vpop.f32.mrf.mxu0 }
  0xe7   :  { %v465_v37 = vadd.f32 %v2610_v38, %v464_v35 }
  0xe9   :  { %2058 = vmatmul.msk.bf16.gmra.mxu0 %vm235_vm0, %v166_v33  ;;  %v760_v42 = vmax.f32 %v465_v37, 0.0 }
  0xee   :  { %v466_v40 = vpop.f32.mrf.mxu0 }
  0xef   :  { %v467_v41 = vadd.f32 %v2610_v38, %v466_v40  ;;  %v65_v40 = vld [vmem:[%s4110_s0 + $0x130] sm:$0xff] }
  0xf1   :  { %v761_v43 = vmax.f32 %v467_v41, 0.0  ;;  %v66_v41 = vld [vmem:[%s4110_s0 + $0x138] sm:$0xff] }
  0xf2   :  { %v171_v45 = vpack.c.bf16 %v66_v41, %v65_v40 }
  0xf3   :  { %v879_v47 = vpack.c.bf16 %v761_v43, %v760_v42 }
  0xf5   :  { %1042 = vmatmul.bf16.gmra.mxu1 %v879_v47 }
  0xf6   :  { %v469_v50 = vpop.f32.mrf.mxu0 }
  0xf7   :  { %v470_v52 = vadd.f32 %v2610_v38, %v469_v50 }
  0xf9   :  { %2059 = vmatmul.msk.bf16.gmra.mxu0 %vm235_vm0, %v167_v48  ;;  %v762_v56 = vmax.f32 %v470_v52, 0.0 }
  0xfe   :  { %v471_v54 = vpop.f32.mrf.mxu0 }
  0xff   :  { %v472_v55 = vadd.f32 %v2610_v38, %v471_v54 }
 0x101   :  { %v763_v57 = vmax.f32 %v472_v55, 0.0 }
 0x103   :  { %v880_v61 = vpack.c.bf16 %v763_v57, %v762_v56  ;;  %v67_v57 = vld [vmem:[%s4110_s0 + $0x140] sm:$0xff] }
 0x105   :  { %1047 = vmatmul.bf16.gmra.mxu1 %v880_v61 }
 0x106   :  { %v474_v63 = vpop.f32.mrf.mxu0 }
 0x107   :  { %v475_v0 = vadd.f32 %v2610_v38, %v474_v63 }
 0x109   :  { %2060 = vmatmul.msk.bf16.gmra.mxu0 %vm235_vm0, %v168_v62  ;;  %v764_v3 = vmax.f32 %v475_v0, 0.0  ;;  %v172_v62 = vpack.c.bf16 %v68_v58, %v67_v57 }
 0x10e   :  { %v476_v1 = vpop.f32.mrf.mxu0 }
 0x10f   :  { %v477_v2 = vadd.f32 %v2610_v38, %v476_v1 }
 0x111   :  { %v765_v4 = vmax.f32 %v477_v2, 0.0 }
 0x112   :  { %v1013_v5 = vpop.f32.mrf.mxu1 }
 0x113   :  { %v881_v8 = vpack.c.bf16 %v765_v4, %v764_v3  ;;  %v1014_v12 = vadd.f32 %v2720_v9, %v1013_v5 }
 0x115   :  { %1052 = vmatmul.bf16.gmra.mxu1 %v881_v8  ;;  %2210 = vtanh.f32 %v1014_v12  ;;  %v70_v12 = vld [vmem:[%s4110_s0 + $0x158] sm:$0xff] }
 0x116   :  { %v479_v11 = vpop.f32.mrf.mxu0 }
 0x117   :  { %v480_v15 = vadd.f32 %v2610_v38, %v479_v11  ;;  %v69_v11 = vld [vmem:[%s4110_s0 + $0x150] sm:$0xff] }
 0x119   :  { %2061 = vmatmul.msk.bf16.gmra.mxu0 %vm235_vm0, %v169_v10  ;;  %v766_v18 = vmax.f32 %v480_v15, 0.0 }
 0x11a   :  { %v1015_v13 = vpop.f32.mrf.mxu1 }
 0x11b   :  { %v1016_v14 = vadd.f32 %v2720_v9, %v1015_v13  ;;  %v2211_v20 = vpop.eup %2210 }
 0x11d   :  { %2212 = vtanh.f32 %v1016_v14 }
 0x11e   :  { %v481_v16 = vpop.f32.mrf.mxu0 }
 0x11f   :  { %v482_v17 = vadd.f32 %v2610_v38, %v481_v16  ;;  %v173_v16 = vpack.c.bf16 %v70_v12, %v69_v11 }
 0x121   :  { %v767_v19 = vmax.f32 %v482_v17, 0.0 }
 0x122   :  { %v1018_v21 = vpop.f32.mrf.mxu1 }
 0x123   :  { %v2213_v24 = vpop.eup %2212  ;;  %v882_v25 = vpack.c.bf16 %v767_v19, %v766_v18  ;;  %v1019_v29 = vadd.f32 %v2720_v9, %v1018_v21 }
 0x124   :  { %v1452_v26 = vpack.c.bf16 %v2213_v24, %v2211_v20 }
 0x125   :  { %1057 = vmatmul.bf16.gmra.mxu1 %v882_v25  ;;  %2214 = vtanh.f32 %v1019_v29  ;;  %v72_v29 = vld [vmem:[%s4110_s0 + $0x168] sm:$0xff] }
 0x126   :  { %v484_v28 = vpop.f32.mrf.mxu0  ;;  %1591 = vmatmul.bf16.vlgmr.msra.gmra.mxu2 %v1452_v26 }
 0x127   :  { %v485_v32 = vadd.f32 %v2610_v38, %v484_v28  ;;  %v71_v28 = vld [vmem:[%s4110_s0 + $0x160] sm:$0xff] }
 0x129   :  { %2062 = vmatmul.msk.bf16.gmra.mxu0 %vm235_vm0, %v170_v27  ;;  %v768_v35 = vmax.f32 %v485_v32, 0.0 }
 0x12a   :  { %v1020_v30 = vpop.f32.mrf.mxu1 }
 0x12b   :  { %v1021_v31 = vadd.f32 %v2720_v9, %v1020_v30  ;;  %v2215_v37 = vpop.eup %2214 }
 0x12d   :  { %2216 = vtanh.f32 %v1021_v31 }
 0x12e   :  { %v486_v33 = vpop.f32.mrf.mxu0 }
 0x12f   :  { %v487_v34 = vadd.f32 %v2610_v38, %v486_v33  ;;  %v174_v33 = vpack.c.bf16 %v72_v29, %v71_v28 }
 0x131   :  { %v769_v36 = vmax.f32 %v487_v34, 0.0 }
 0x132   :  { %v1023_v39 = vpop.f32.mrf.mxu1 }
 0x133   :  { %v2217_v42 = vpop.eup %2216  ;;  %v883_v43 = vpack.c.bf16 %v769_v36, %v768_v35  ;;  %v1024_v47 = vadd.f32 %v2720_v9, %v1023_v39 }
 0x134   :  { %v1453_v44 = vpack.c.bf16 %v2217_v42, %v2215_v37 }
 0x135   :  { %1062 = vmatmul.bf16.gmra.mxu1 %v883_v43  ;;  %2218 = vtanh.f32 %v1024_v47  ;;  %v74_v47 = vld [vmem:[%s4110_s0 + $0x178] sm:$0xff] }
 0x136   :  { %v489_v46 = vpop.f32.mrf.mxu0  ;;  %1596 = vmatmul.bf16.gmra.mxu2 %v1453_v44 }
 0x137   :  { %v490_v50 = vadd.f32 %v2610_v38, %v489_v46  ;;  %v73_v46 = vld [vmem:[%s4110_s0 + $0x170] sm:$0xff] }
 0x139   :  { %2063 = vmatmul.msk.bf16.gmra.mxu0 %vm235_vm0, %v171_v45  ;;  %v770_v53 = vmax.f32 %v490_v50, 0.0 }
 0x13a   :  { %v1025_v48 = vpop.f32.mrf.mxu1 }
 0x13b   :  { %v1026_v49 = vadd.f32 %v2720_v9, %v1025_v48  ;;  %v2219_v55 = vpop.eup %2218 }
 0x13d   :  { %2220 = vtanh.f32 %v1026_v49 }
 0x13e   :  { %v491_v51 = vpop.f32.mrf.mxu0 }
 0x13f   :  { %v492_v52 = vadd.f32 %v2610_v38, %v491_v51  ;;  %v175_v51 = vpack.c.bf16 %v74_v47, %v73_v46 }
 0x141   :  { %v771_v54 = vmax.f32 %v492_v52, 0.0 }
 0x142   :  { %v1028_v56 = vpop.f32.mrf.mxu1 }
 0x143   :  { %v2221_v59 = vpop.eup %2220  ;;  %v884_v60 = vpack.c.bf16 %v771_v54, %v770_v53  ;;  %v1029_v0 = vadd.f32 %v2720_v9, %v1028_v56 }
 0x144   :  { %v1454_v61 = vpack.c.bf16 %v2221_v59, %v2219_v55 }
 0x145   :  { %1067 = vmatmul.bf16.gmra.mxu1 %v884_v60  ;;  %2222 = vtanh.f32 %v1029_v0  ;;  %v76_v0 = vld [vmem:[%s4110_s0 + $0x188] sm:$0xff] }
 0x146   :  { %v494_v63 = vpop.f32.mrf.mxu0  ;;  %1601 = vmatmul.bf16.gmra.mxu2 %v1454_v61 }
 0x147   :  { %v495_v3 = vadd.f32 %v2610_v38, %v494_v63  ;;  %v75_v63 = vld [vmem:[%s4110_s0 + $0x180] sm:$0xff] }
 0x149   :  { %2064 = vmatmul.msk.bf16.gmra.mxu0 %vm235_vm0, %v172_v62  ;;  %v772_v6 = vmax.f32 %v495_v3, 0.0 }
 0x14a   :  { %v1030_v1 = vpop.f32.mrf.mxu1 }
 0x14b   :  { %v1031_v2 = vadd.f32 %v2720_v9, %v1030_v1  ;;  %v2223_v8 = vpop.eup %2222 }
 0x14d   :  { %2224 = vtanh.f32 %v1031_v2 }
 0x14e   :  { %v496_v4 = vpop.f32.mrf.mxu0 }
 0x14f   :  { %v497_v5 = vadd.f32 %v2610_v38, %v496_v4  ;;  %v176_v4 = vpack.c.bf16 %v76_v0, %v75_v63 }
 0x151   :  { %v773_v7 = vmax.f32 %v497_v5, 0.0 }
 0x152   :  { %v1033_v10 = vpop.f32.mrf.mxu1 }
 0x153   :  { %v2225_v13 = vpop.eup %2224  ;;  %v885_v14 = vpack.c.bf16 %v773_v7, %v772_v6  ;;  %v1034_v18 = vadd.f32 %v2720_v9, %v1033_v10 }
 0x154   :  { %v1455_v15 = vpack.c.bf16 %v2225_v13, %v2223_v8 }
 0x155   :  { %1072 = vmatmul.bf16.gmra.mxu1 %v885_v14  ;;  %2226 = vtanh.f32 %v1034_v18  ;;  %v78_v18 = vld [vmem:[%s4110_s0 + $0x198] sm:$0xff] }
 0x156   :  { %v499_v17 = vpop.f32.mrf.mxu0  ;;  %1606 = vmatmul.bf16.gmra.mxu2 %v1455_v15 }
 0x157   :  { %v500_v21 = vadd.f32 %v2610_v38, %v499_v17  ;;  %v77_v17 = vld [vmem:[%s4110_s0 + $0x190] sm:$0xff] }
 0x159   :  { %2065 = vmatmul.msk.bf16.gmra.mxu0 %vm235_vm0, %v173_v16  ;;  %v774_v24 = vmax.f32 %v500_v21, 0.0 }
 0x15a   :  { %v1035_v19 = vpop.f32.mrf.mxu1 }
 0x15b   :  { %v1036_v20 = vadd.f32 %v2720_v9, %v1035_v19  ;;  %v2227_v26 = vpop.eup %2226 }
 0x15d   :  { %2228 = vtanh.f32 %v1036_v20 }
 0x15e   :  { %v501_v22 = vpop.f32.mrf.mxu0 }
 0x15f   :  { %v502_v23 = vadd.f32 %v2610_v38, %v501_v22  ;;  %v177_v22 = vpack.c.bf16 %v78_v18, %v77_v17 }
 0x161   :  { %v775_v25 = vmax.f32 %v502_v23, 0.0 }
 0x162   :  { %v1038_v27 = vpop.f32.mrf.mxu1 }
 0x163   :  { %v2229_v30 = vpop.eup %2228  ;;  %v886_v31 = vpack.c.bf16 %v775_v25, %v774_v24  ;;  %v1039_v35 = vadd.f32 %v2720_v9, %v1038_v27 }
 0x164   :  { %v1456_v32 = vpack.c.bf16 %v2229_v30, %v2227_v26 }
 0x165   :  { %1077 = vmatmul.bf16.gmra.mxu1 %v886_v31  ;;  %2230 = vtanh.f32 %v1039_v35  ;;  %v80_v35 = vld [vmem:[%s4110_s0 + $0x1a8] sm:$0xff] }
 0x166   :  { %v504_v34 = vpop.f32.mrf.mxu0  ;;  %1611 = vmatmul.bf16.gmra.mxu2 %v1456_v32 }
 0x167   :  { %v505_v39 = vadd.f32 %v2610_v38, %v504_v34  ;;  %v79_v34 = vld [vmem:[%s4110_s0 + $0x1a0] sm:$0xff] }
 0x169   :  { %2066 = vmatmul.msk.bf16.gmra.mxu0 %vm235_vm0, %v174_v33  ;;  %v776_v42 = vmax.f32 %v505_v39, 0.0 }
 0x16a   :  { %v1040_v36 = vpop.f32.mrf.mxu1 }
 0x16b   :  { %v1041_v37 = vadd.f32 %v2720_v9, %v1040_v36  ;;  %v2231_v44 = vpop.eup %2230 }
 0x16d   :  { %2232 = vtanh.f32 %v1041_v37 }
 0x16e   :  { %v506_v40 = vpop.f32.mrf.mxu0 }
 0x16f   :  { %v507_v41 = vadd.f32 %v2610_v38, %v506_v40  ;;  %v178_v40 = vpack.c.bf16 %v80_v35, %v79_v34 }
 0x171   :  { %v777_v43 = vmax.f32 %v507_v41, 0.0 }
 0x172   :  { %v1043_v45 = vpop.f32.mrf.mxu1 }
 0x173   :  { %v2233_v48 = vpop.eup %2232  ;;  %v887_v49 = vpack.c.bf16 %v777_v43, %v776_v42  ;;  %v1044_v53 = vadd.f32 %v2720_v9, %v1043_v45  ;;  %v2824_v42 = vld [vmem:[%s4115_s6] ss:$0 sm:$0xff] }
 0x174   :  { %v1457_v50 = vpack.c.bf16 %v2233_v48, %v2231_v44 }
 0x175   :  { %1082 = vmatmul.bf16.gmra.mxu1 %v887_v49  ;;  %2234 = vtanh.f32 %v1044_v53 }
 0x176   :  { %v509_v52 = vpop.f32.mrf.mxu0  ;;  %1616 = vmatmul.bf16.gmra.mxu2 %v1457_v50 }
 0x177   :  { %v510_v56 = vadd.f32 %v2610_v38, %v509_v52 }
 0x179   :  { %2067 = vmatmul.msk.bf16.gmra.mxu0 %vm235_vm0, %v175_v51  ;;  %v778_v59 = vmax.f32 %v510_v56, 0.0 }
 0x17a   :  { %v1045_v54 = vpop.f32.mrf.mxu1 }
 0x17b   :  { %v1046_v55 = vadd.f32 %v2720_v9, %v1045_v54  ;;  %v2235_v61 = vpop.eup %2234 }
 0x17d   :  { %2236 = vtanh.f32 %v1046_v55 }
 0x17e   :  { %v511_v57 = vpop.f32.mrf.mxu0 }
 0x17f   :  { %v512_v58 = vadd.f32 %v2610_v38, %v511_v57  ;;  %v81_v57 = vld [vmem:[%s4110_s0 + $0x1b0] sm:$0xff] }
 0x181   :  { %v779_v60 = vmax.f32 %v512_v58, 0.0  ;;  %v82_v58 = vld [vmem:[%s4110_s0 + $0x1b8] sm:$0xff] }
 0x182   :  { %v1048_v62 = vpop.f32.mrf.mxu1 }
 0x183   :  { %v2237_v1 = vpop.eup %2236  ;;  %v888_v2 = vpack.c.bf16 %v779_v60, %v778_v59  ;;  %v1049_v6 = vadd.f32 %v2720_v9, %v1048_v62  ;;  %v179_v62 = vpack.c.bf16 %v82_v58, %v81_v57 }
 0x184   :  { %v1458_v3 = vpack.c.bf16 %v2237_v1, %v2235_v61 }
 0x185   :  { %1087 = vmatmul.bf16.gmra.mxu1 %v888_v2  ;;  %2238 = vtanh.f32 %v1049_v6 }
 0x186   :  { %v514_v5 = vpop.f32.mrf.mxu0  ;;  %1621 = vmatmul.bf16.gmra.mxu2 %v1458_v3 }
 0x187   :  { %v515_v10 = vadd.f32 %v2610_v38, %v514_v5 }
 0x189   :  { %2068 = vmatmul.msk.bf16.gmra.mxu0 %vm235_vm0, %v176_v4  ;;  %v780_v13 = vmax.f32 %v515_v10, 0.0 }
 0x18a   :  { %v1050_v7 = vpop.f32.mrf.mxu1 }
 0x18b   :  { %v1051_v8 = vadd.f32 %v2720_v9, %v1050_v7  ;;  %v2239_v15 = vpop.eup %2238 }
 0x18d   :  { %2240 = vtanh.f32 %v1051_v8 }
 0x18e   :  { %v516_v11 = vpop.f32.mrf.mxu0 }
 0x18f   :  { %v517_v12 = vadd.f32 %v2610_v38, %v516_v11 }
 0x191   :  { %v781_v14 = vmax.f32 %v517_v12, 0.0 }
 0x192   :  { %v1053_v16 = vpop.f32.mrf.mxu1 }
 0x193   :  { %v2241_v19 = vpop.eup %2240  ;;  %v889_v20 = vpack.c.bf16 %v781_v14, %v780_v13  ;;  %v1054_v24 = vadd.f32 %v2720_v9, %v1053_v16  ;;  %v84_v16 = vld [vmem:[%s4110_s0 + $0x1c8] sm:$0xff] }
 0x194   :  { %v1459_v21 = vpack.c.bf16 %v2241_v19, %v2239_v15  ;;  %v83_v15 = vld [vmem:[%s4110_s0 + $0x1c0] sm:$0xff] }
 0x195   :  { %1092 = vmatmul.bf16.gmra.mxu1 %v889_v20  ;;  %2242 = vtanh.f32 %v1054_v24  ;;  %v180_v20 = vpack.c.bf16 %v84_v16, %v83_v15 }
 0x196   :  { %v519_v23 = vpop.f32.mrf.mxu0  ;;  %1626 = vmatmul.bf16.gmra.mxu2 %v1459_v21 }
 0x197   :  { %v520_v27 = vadd.f32 %v2610_v38, %v519_v23 }
 0x199   :  { %2069 = vmatmul.msk.bf16.gmra.mxu0 %vm235_vm0, %v177_v22  ;;  %v782_v30 = vmax.f32 %v520_v27, 0.0 }
 0x19a   :  { %v1055_v25 = vpop.f32.mrf.mxu1 }
 0x19b   :  { %v1056_v26 = vadd.f32 %v2720_v9, %v1055_v25  ;;  %v2243_v32 = vpop.eup %2242 }
 0x19d   :  { %2244 = vtanh.f32 %v1056_v26 }
 0x19e   :  { %v521_v28 = vpop.f32.mrf.mxu0 }
 0x19f   :  { %v522_v29 = vadd.f32 %v2610_v38, %v521_v28 }
 0x1a1   :  { %v783_v31 = vmax.f32 %v522_v29, 0.0 }
 0x1a2   :  { %v1058_v33 = vpop.f32.mrf.mxu1 }
 0x1a3   :  { %v2245_v36 = vpop.eup %2244  ;;  %v890_v37 = vpack.c.bf16 %v783_v31, %v782_v30  ;;  %v1059_v43 = vadd.f32 %v2720_v9, %v1058_v33 }
 0x1a4   :  { %v1460_v39 = vpack.c.bf16 %v2245_v36, %v2243_v32  ;;  %v85_v36 = vld [vmem:[%s4110_s0 + $0x1d0] sm:$0xff] }
 0x1a5   :  { %1097 = vmatmul.bf16.gmra.mxu1 %v890_v37  ;;  %2246 = vtanh.f32 %v1059_v43  ;;  %v86_v37 = vld [vmem:[%s4110_s0 + $0x1d8] sm:$0xff] }
 0x1a6   :  { %v524_v41 = vpop.f32.mrf.mxu0  ;;  %1631 = vmatmul.bf16.gmra.mxu2 %v1460_v39  ;;  %v181_v43 = vpack.c.bf16 %v86_v37, %v85_v36 }
 0x1a7   :  { %v525_v48 = vadd.f32 %v2610_v38, %v524_v41 }
 0x1a9   :  { %2070 = vmatmul.msk.bf16.gmra.mxu0 %vm235_vm0, %v178_v40  ;;  %v1592_v44 = vpop.f32.mrf.mxu2  ;;  %v784_v51 = vmax.f32 %v525_v48, 0.0 }
 0x1aa   :  { %v1593_v45 = vadd.f32 %v2824_v42, %v1592_v44  ;;  %v1060_v46 = vpop.f32.mrf.mxu1 }
 0x1ab   :  { %v1061_v47 = vadd.f32 %v2720_v9, %v1060_v46  ;;  %v2247_v54 = vpop.eup %2246 }
 0x1ac   :  { %1907 = vst.msk [vmem:[%s4116_s7] sm:$0xff] %vm1906_vm1, %v1593_v45 }
 0x1ad   :  { %2248 = vtanh.f32 %v1061_v47 }
 0x1ae   :  { %v526_v49 = vpop.f32.mrf.mxu0 }
 0x1af   :  { %v527_v50 = vadd.f32 %v2610_v38, %v526_v49 }
 0x1b1   :  { %v785_v52 = vmax.f32 %v527_v50, 0.0  ;;  %v1594_v53 = vpop.f32.mrf.mxu2 }
 0x1b2   :  { %v1595_v55 = vadd.f32 %v2824_v42, %v1594_v53  ;;  %v1063_v56 = vpop.f32.mrf.mxu1 }
 0x1b3   :  { %v2249_v59 = vpop.eup %2248  ;;  %v891_v60 = vpack.c.bf16 %v785_v52, %v784_v51  ;;  %v1064_v0 = vadd.f32 %v2720_v9, %v1063_v56 }
 0x1b4   :  { %1908 = vst.msk [vmem:[%s4116_s7 + $0x8] sm:$0xff] %vm1906_vm1, %v1595_v55  ;;  %v1461_v61 = vpack.c.bf16 %v2249_v59, %v2247_v54  ;;  %v87_v59 = vld [vmem:[%s4110_s0 + $0x1e0] sm:$0xff] }
 0x1b5   :  { %1102 = vmatmul.bf16.gmra.mxu1 %v891_v60  ;;  %2250 = vtanh.f32 %v1064_v0  ;;  %v88_v60 = vld [vmem:[%s4110_s0 + $0x1e8] sm:$0xff] }
 0x1b6   :  { %v529_v63 = vpop.f32.mrf.mxu0  ;;  %1636 = vmatmul.bf16.gmra.mxu2 %v1461_v61  ;;  %v182_v0 = vpack.c.bf16 %v88_v60, %v87_v59 }
 0x1b7   :  { %v530_v5 = vadd.f32 %v2610_v38, %v529_v63 }
 0x1b9   :  { %2071 = vmatmul.msk.bf16.gmra.mxu0 %vm235_vm0, %v179_v62  ;;  %v1597_v1 = vpop.f32.mrf.mxu2  ;;  %v786_v8 = vmax.f32 %v530_v5, 0.0 }
 0x1ba   :  { %v1598_v2 = vadd.f32 %v2824_v42, %v1597_v1  ;;  %v1065_v3 = vpop.f32.mrf.mxu1 }
 0x1bb   :  { %v1066_v4 = vadd.f32 %v2720_v9, %v1065_v3  ;;  %v2251_v12 = vpop.eup %2250 }
 0x1bc   :  { %1909 = vst.msk [vmem:[%s4116_s7 + $0x10] sm:$0xff] %vm1906_vm1, %v1598_v2 }
 0x1bd   :  { %2252 = vtanh.f32 %v1066_v4 }
 0x1be   :  { %v531_v6 = vpop.f32.mrf.mxu0 }
 0x1bf   :  { %v532_v7 = vadd.f32 %v2610_v38, %v531_v6 }
 0x1c1   :  { %v787_v10 = vmax.f32 %v532_v7, 0.0  ;;  %v1599_v11 = vpop.f32.mrf.mxu2 }
 0x1c2   :  { %v1600_v13 = vadd.f32 %v2824_v42, %v1599_v11  ;;  %v1068_v14 = vpop.f32.mrf.mxu1 }
 0x1c3   :  { %v2253_v17 = vpop.eup %2252  ;;  %v892_v18 = vpack.c.bf16 %v787_v10, %v786_v8  ;;  %v1069_v22 = vadd.f32 %v2720_v9, %v1068_v14 }
 0x1c4   :  { %1910 = vst.msk [vmem:[%s4116_s7 + $0x18] sm:$0xff] %vm1906_vm1, %v1600_v13  ;;  %v1462_v19 = vpack.c.bf16 %v2253_v17, %v2251_v12  ;;  %v89_v17 = vld [vmem:[%s4110_s0 + $0x1f0] sm:$0xff] }
 0x1c5   :  { %1107 = vmatmul.bf16.gmra.mxu1 %v892_v18  ;;  %2254 = vtanh.f32 %v1069_v22  ;;  %v90_v18 = vld [vmem:[%s4110_s0 + $0x1f8] sm:$0xff] }
 0x1c6   :  { %v534_v21 = vpop.f32.mrf.mxu0  ;;  %1641 = vmatmul.bf16.gmra.mxu2 %v1462_v19  ;;  %v183_v22 = vpack.c.bf16 %v90_v18, %v89_v17 }
 0x1c7   :  { %v535_v27 = vadd.f32 %v2610_v38, %v534_v21 }
 0x1c9   :  { %2072 = vmatmul.msk.bf16.gmra.mxu0 %vm235_vm0, %v180_v20  ;;  %v1602_v23 = vpop.f32.mrf.mxu2  ;;  %v788_v30 = vmax.f32 %v535_v27, 0.0 }
 0x1ca   :  { %v1603_v24 = vadd.f32 %v2824_v42, %v1602_v23  ;;  %v1070_v25 = vpop.f32.mrf.mxu1 }
 0x1cb   :  { %v1071_v26 = vadd.f32 %v2720_v9, %v1070_v25  ;;  %v2255_v33 = vpop.eup %2254 }
 0x1cc   :  { %1911 = vst.msk [vmem:[%s4116_s7 + $0x20] sm:$0xff] %vm1906_vm1, %v1603_v24 }
 0x1cd   :  { %2256 = vtanh.f32 %v1071_v26 }
 0x1ce   :  { %v536_v28 = vpop.f32.mrf.mxu0 }
 0x1cf   :  { %v537_v29 = vadd.f32 %v2610_v38, %v536_v28 }
 0x1d1   :  { %v789_v31 = vmax.f32 %v537_v29, 0.0  ;;  %v1604_v32 = vpop.f32.mrf.mxu2 }
 0x1d2   :  { %v1605_v34 = vadd.f32 %v2824_v42, %v1604_v32  ;;  %v1073_v35 = vpop.f32.mrf.mxu1 }
 0x1d3   :  { %v2257_v39 = vpop.eup %2256  ;;  %v893_v40 = vpack.c.bf16 %v789_v31, %v788_v30  ;;  %v1074_v45 = vadd.f32 %v2720_v9, %v1073_v35 }
 0x1d4   :  { %1912 = vst.msk [vmem:[%s4116_s7 + $0x28] sm:$0xff] %vm1906_vm1, %v1605_v34  ;;  %v1463_v41 = vpack.c.bf16 %v2257_v39, %v2255_v33  ;;  %v91_v39 = vld [vmem:[%s4110_s0 + $0x200] sm:$0xff] }
 0x1d5   :  { %1112 = vmatmul.bf16.gmra.mxu1 %v893_v40  ;;  %2258 = vtanh.f32 %v1074_v45  ;;  %v92_v40 = vld [vmem:[%s4110_s0 + $0x208] sm:$0xff] }
 0x1d6   :  { %v539_v44 = vpop.f32.mrf.mxu0  ;;  %1646 = vmatmul.bf16.gmra.mxu2 %v1463_v41  ;;  %v184_v45 = vpack.c.bf16 %v92_v40, %v91_v39 }
 0x1d7   :  { %v540_v50 = vadd.f32 %v2610_v38, %v539_v44 }
 0x1d9   :  { %2073 = vmatmul.msk.bf16.gmra.mxu0 %vm235_vm0, %v181_v43  ;;  %v1607_v46 = vpop.f32.mrf.mxu2  ;;  %v790_v53 = vmax.f32 %v540_v50, 0.0 }
 0x1da   :  { %v1608_v47 = vadd.f32 %v2824_v42, %v1607_v46  ;;  %v1075_v48 = vpop.f32.mrf.mxu1 }
 0x1db   :  { %v1076_v49 = vadd.f32 %v2720_v9, %v1075_v48  ;;  %v2259_v56 = vpop.eup %2258 }
 0x1dc   :  { %1913 = vst.msk [vmem:[%s4116_s7 + $0x30] sm:$0xff] %vm1906_vm1, %v1608_v47 }
 0x1dd   :  { %2260 = vtanh.f32 %v1076_v49 }
 0x1de   :  { %v541_v51 = vpop.f32.mrf.mxu0 }
 0x1df   :  { %v542_v52 = vadd.f32 %v2610_v38, %v541_v51 }
 0x1e1   :  { %v791_v54 = vmax.f32 %v542_v52, 0.0  ;;  %v1609_v55 = vpop.f32.mrf.mxu2 }
 0x1e2   :  { %v1610_v57 = vadd.f32 %v2824_v42, %v1609_v55  ;;  %v1078_v58 = vpop.f32.mrf.mxu1 }
 0x1e3   :  { %v2261_v61 = vpop.eup %2260  ;;  %v894_v62 = vpack.c.bf16 %v791_v54, %v790_v53  ;;  %v1079_v2 = vadd.f32 %v2720_v9, %v1078_v58  ;;  %v2964_v54 = vld [vmem:[%s4111_s2] ss:$0 sm:$0xff] }
 0x1e4   :  { %1914 = vst.msk [vmem:[%s4116_s7 + $0x38] sm:$0xff] %vm1906_vm1, %v1610_v57  ;;  %v1464_v63 = vpack.c.bf16 %v2261_v61, %v2259_v56 }
 0x1e5   :  { %1117 = vmatmul.bf16.gmra.mxu1 %v894_v62  ;;  %2262 = vtanh.f32 %v1079_v2  ;;  %v94_v62 = vld [vmem:[%s4110_s0 + $0x218] sm:$0xff] }
 0x1e6   :  { %v544_v1 = vpop.f32.mrf.mxu0  ;;  %1651 = vmatmul.bf16.gmra.mxu2 %v1464_v63 }
 0x1e7   :  { %v545_v7 = vadd.f32 %v2610_v38, %v544_v1 }
 0x1e9   :  { %2074 = vmatmul.msk.bf16.gmra.mxu0 %vm235_vm0, %v182_v0  ;;  %v1612_v3 = vpop.f32.mrf.mxu2  ;;  %v792_v11 = vmax.f32 %v545_v7, 0.0 }
 0x1ea   :  { %v1613_v4 = vadd.f32 %v2824_v42, %v1612_v3  ;;  %v1080_v5 = vpop.f32.mrf.mxu1 }
 0x1eb   :  { %v1081_v6 = vadd.f32 %v2720_v9, %v1080_v5  ;;  %v2263_v14 = vpop.eup %2262 }
 0x1ec   :  { %1915 = vst.msk [vmem:[%s4116_s7 + $0x40] sm:$0xff] %vm1906_vm1, %v1613_v4 }
 0x1ed   :  { %2264 = vtanh.f32 %v1081_v6 }
 0x1ee   :  { %v546_v8 = vpop.f32.mrf.mxu0 }
 0x1ef   :  { %v547_v10 = vadd.f32 %v2610_v38, %v546_v8 }
 0x1f1   :  { %v793_v12 = vmax.f32 %v547_v10, 0.0  ;;  %v1614_v13 = vpop.f32.mrf.mxu2 }
 0x1f2   :  { %v1615_v15 = vadd.f32 %v2824_v42, %v1614_v13  ;;  %v1083_v16 = vpop.f32.mrf.mxu1 }
 0x1f3   :  { %v2265_v19 = vpop.eup %2264  ;;  %v895_v20 = vpack.c.bf16 %v793_v12, %v792_v11  ;;  %v1084_v24 = vadd.f32 %v2720_v9, %v1083_v16 }
 0x1f4   :  { %1916 = vst.msk [vmem:[%s4116_s7 + $0x48] sm:$0xff] %vm1906_vm1, %v1615_v15  ;;  %v1465_v21 = vpack.c.bf16 %v2265_v19, %v2263_v14  ;;  %v95_v19 = vld [vmem:[%s4110_s0 + $0x220] sm:$0xff] }
 0x1f5   :  { %1122 = vmatmul.bf16.gmra.mxu1 %v895_v20  ;;  %2266 = vtanh.f32 %v1084_v24  ;;  %v96_v20 = vld [vmem:[%s4110_s0 + $0x228] sm:$0xff] }
 0x1f6   :  { %v549_v23 = vpop.f32.mrf.mxu0  ;;  %1656 = vmatmul.bf16.gmra.mxu2 %v1465_v21  ;;  %v186_v24 = vpack.c.bf16 %v96_v20, %v95_v19 }
 0x1f7   :  { %v550_v29 = vadd.f32 %v2610_v38, %v549_v23 }
 0x1f9   :  { %2075 = vmatmul.msk.bf16.gmra.mxu0 %vm235_vm0, %v183_v22  ;;  %v1617_v25 = vpop.f32.mrf.mxu2  ;;  %v794_v32 = vmax.f32 %v550_v29, 0.0 }
 0x1fa   :  { %v1618_v26 = vadd.f32 %v2824_v42, %v1617_v25  ;;  %v1085_v27 = vpop.f32.mrf.mxu1 }
 0x1fb   :  { %v1086_v28 = vadd.f32 %v2720_v9, %v1085_v27  ;;  %v2267_v35 = vpop.eup %2266 }
 0x1fc   :  { %1917 = vst.msk [vmem:[%s4116_s7 + $0x50] sm:$0xff] %vm1906_vm1, %v1618_v26 }
 0x1fd   :  { %2268 = vtanh.f32 %v1086_v28 }
 0x1fe   :  { %v551_v30 = vpop.f32.mrf.mxu0 }
 0x1ff   :  { %v552_v31 = vadd.f32 %v2610_v38, %v551_v30 }
 0x201   :  { %v795_v33 = vmax.f32 %v552_v31, 0.0  ;;  %v1619_v34 = vpop.f32.mrf.mxu2 }
 0x202   :  { %v1620_v36 = vadd.f32 %v2824_v42, %v1619_v34  ;;  %v1088_v37 = vpop.f32.mrf.mxu1 }
 0x203   :  { %v2269_v41 = vpop.eup %2268  ;;  %v896_v43 = vpack.c.bf16 %v795_v33, %v794_v32  ;;  %v1089_v47 = vadd.f32 %v2720_v9, %v1088_v37 }
 0x204   :  { %1918 = vst.msk [vmem:[%s4116_s7 + $0x58] sm:$0xff] %vm1906_vm1, %v1620_v36  ;;  %v1466_v44 = vpack.c.bf16 %v2269_v41, %v2267_v35  ;;  %v97_v41 = vld [vmem:[%s4110_s0 + $0x230] sm:$0xff] }
 0x205   :  { %1127 = vmatmul.bf16.gmra.mxu1 %v896_v43  ;;  %2270 = vtanh.f32 %v1089_v47  ;;  %v98_v43 = vld [vmem:[%s4110_s0 + $0x238] sm:$0xff] }
 0x206   :  { %v554_v46 = vpop.f32.mrf.mxu0  ;;  %1661 = vmatmul.bf16.gmra.mxu2 %v1466_v44  ;;  %v187_v47 = vpack.c.bf16 %v98_v43, %v97_v41 }
 0x207   :  { %v555_v52 = vadd.f32 %v2610_v38, %v554_v46  ;;  %v93_v38 = vld [vmem:[%s4110_s0 + $0x210] sm:$0xff] }
 0x208   :  { %v185_v2 = vpack.c.bf16 %v94_v62, %v93_v38 }
 0x209   :  { %2076 = vmatmul.msk.bf16.gmra.mxu0 %vm235_vm0, %v184_v45  ;;  %v1622_v48 = vpop.f32.mrf.mxu2  ;;  %v796_v56 = vmax.f32 %v555_v52, 0.0 }
 0x20a   :  { %v1623_v49 = vadd.f32 %v2824_v42, %v1622_v48  ;;  %v1090_v50 = vpop.f32.mrf.mxu1 }
 0x20b   :  { %v1091_v51 = vadd.f32 %v2720_v9, %v1090_v50  ;;  %v2271_v59 = vpop.eup %2270 }
 0x20c   :  { %1919 = vst.msk [vmem:[%s4116_s7 + $0x60] sm:$0xff] %vm1906_vm1, %v1623_v49 }
 0x20d   :  { %2272 = vtanh.f32 %v1091_v51 }
 0x20e   :  { %v556_v53 = vpop.f32.mrf.mxu0 }
 0x20f   :  { %v557_v55 = vadd.f32 %v2964_v54, %v556_v53 }
 0x211   :  { %v797_v57 = vmax.f32 %v557_v55, 0.0  ;;  %v1624_v58 = vpop.f32.mrf.mxu2 }
 0x212   :  { %v1625_v60 = vadd.f32 %v2824_v42, %v1624_v58  ;;  %v1093_v61 = vpop.f32.mrf.mxu1 }
 0x213   :  { %v2273_v63 = vpop.eup %2272  ;;  %v897_v0 = vpack.c.bf16 %v797_v57, %v796_v56  ;;  %v1094_v4 = vadd.f32 %v2720_v9, %v1093_v61 }
 0x214   :  { %1920 = vst.msk [vmem:[%s4116_s7 + $0x68] sm:$0xff] %vm1906_vm1, %v1625_v60  ;;  %v1467_v1 = vpack.c.bf16 %v2273_v63, %v2271_v59  ;;  %v99_v63 = vld [vmem:[%s4110_s0 + $0x240] sm:$0xff] }
 0x215   :  { %1132 = vmatmul.bf16.gmra.mxu1 %v897_v0  ;;  %2274 = vtanh.f32 %v1094_v4  ;;  %v100_v0 = vld [vmem:[%s4110_s0 + $0x248] sm:$0xff] }
 0x216   :  { %v559_v3 = vpop.f32.mrf.mxu0  ;;  %1666 = vmatmul.bf16.gmra.mxu2 %v1467_v1  ;;  %v188_v4 = vpack.c.bf16 %v100_v0, %v99_v63 }
 0x217   :  { %v560_v10 = vadd.f32 %v2964_v54, %v559_v3 }
 0x219   :  { %2077 = vmatmul.msk.bf16.gmra.mxu0 %vm235_vm0, %v185_v2  ;;  %v1627_v5 = vpop.f32.mrf.mxu2  ;;  %v798_v13 = vmax.f32 %v560_v10, 0.0 }
 0x21a   :  { %v1628_v6 = vadd.f32 %v2824_v42, %v1627_v5  ;;  %v1095_v7 = vpop.f32.mrf.mxu1 }
 0x21b   :  { %v1096_v8 = vadd.f32 %v2720_v9, %v1095_v7  ;;  %v2275_v16 = vpop.eup %2274 }
 0x21c   :  { %1921 = vst.msk [vmem:[%s4116_s7 + $0x70] sm:$0xff] %vm1906_vm1, %v1628_v6 }
 0x21d   :  { %2276 = vtanh.f32 %v1096_v8 }
 0x21e   :  { %v561_v11 = vpop.f32.mrf.mxu0 }
 0x21f   :  { %v562_v12 = vadd.f32 %v2964_v54, %v561_v11 }
 0x221   :  { %v799_v14 = vmax.f32 %v562_v12, 0.0  ;;  %v1629_v15 = vpop.f32.mrf.mxu2 }
 0x222   :  { %v1630_v17 = vadd.f32 %v2824_v42, %v1629_v15  ;;  %v1098_v18 = vpop.f32.mrf.mxu1 }
 0x223   :  { %v2277_v21 = vpop.eup %2276  ;;  %v898_v22 = vpack.c.bf16 %v799_v14, %v798_v13  ;;  %v1099_v26 = vadd.f32 %v2720_v9, %v1098_v18 }
 0x224   :  { %1922 = vst.msk [vmem:[%s4116_s7 + $0x78] sm:$0xff] %vm1906_vm1, %v1630_v17  ;;  %v1468_v23 = vpack.c.bf16 %v2277_v21, %v2275_v16  ;;  %v102_v21 = vld [vmem:[%s4110_s0 + $0x258] sm:$0xff] }
 0x225   :  { %1137 = vmatmul.bf16.gmra.mxu1 %v898_v22  ;;  %2278 = vtanh.f32 %v1099_v26 }
 0x226   :  { %v564_v25 = vpop.f32.mrf.mxu0  ;;  %1671 = vmatmul.bf16.gmra.mxu2 %v1468_v23 }
 0x227   :  { %v565_v31 = vadd.f32 %v2964_v54, %v564_v25 }
 0x229   :  { %2078 = vmatmul.msk.bf16.gmra.mxu0 %vm235_vm0, %v186_v24  ;;  %v1632_v27 = vpop.f32.mrf.mxu2  ;;  %v800_v34 = vmax.f32 %v565_v31, 0.0 }
 0x22a   :  { %v1633_v28 = vadd.f32 %v2824_v42, %v1632_v27  ;;  %v1100_v29 = vpop.f32.mrf.mxu1  ;;  %v3065_v27 = vld [vmem:[%s4113_s4] ss:$0 sm:$0xff] }
 0x22b   :  { %v1101_v30 = vadd.f32 %v2720_v9, %v1100_v29  ;;  %v2279_v37 = vpop.eup %2278 }
 0x22c   :  { %1923 = vst.msk [vmem:[%s4116_s7 + $0x80] sm:$0xff] %vm1906_vm1, %v1633_v28 }
 0x22d   :  { %2280 = vtanh.f32 %v1101_v30 }
 0x22e   :  { %v566_v32 = vpop.f32.mrf.mxu0 }
 0x22f   :  { %v567_v33 = vadd.f32 %v2964_v54, %v566_v32 }
 0x231   :  { %v801_v35 = vmax.f32 %v567_v33, 0.0  ;;  %v1634_v36 = vpop.f32.mrf.mxu2 }
 0x232   :  { %v1635_v39 = vadd.f32 %v2824_v42, %v1634_v36  ;;  %v1103_v40 = vpop.f32.mrf.mxu1 }
 0x233   :  { %v2281_v44 = vpop.eup %2280  ;;  %v899_v45 = vpack.c.bf16 %v801_v35, %v800_v34  ;;  %v1104_v49 = vadd.f32 %v2720_v9, %v1103_v40 }
 0x234   :  { %1924 = vst.msk [vmem:[%s4116_s7 + $0x88] sm:$0xff] %vm1906_vm1, %v1635_v39  ;;  %v1469_v46 = vpack.c.bf16 %v2281_v44, %v2279_v37  ;;  %v103_v44 = vld [vmem:[%s4110_s0 + $0x260] sm:$0xff] }
 0x235   :  { %1142 = vmatmul.bf16.gmra.mxu1 %v899_v45  ;;  %2282 = vtanh.f32 %v1104_v49  ;;  %v104_v45 = vld [vmem:[%s4110_s0 + $0x268] sm:$0xff] }
 0x236   :  { %v569_v48 = vpop.f32.mrf.mxu0  ;;  %1676 = vmatmul.bf16.gmra.mxu2 %v1469_v46  ;;  %v190_v49 = vpack.c.bf16 %v104_v45, %v103_v44  ;;  %v2468_v44 = vld [vmem:[%s4114_s5 + $0x8] sm:$0xff] }
 0x237   :  { %v570_v55 = vadd.f32 %v2964_v54, %v569_v48 }
 0x239   :  { %2079 = vmatmul.msk.bf16.gmra.mxu0 %vm235_vm0, %v187_v47  ;;  %v1637_v50 = vpop.f32.mrf.mxu2  ;;  %v802_v58 = vmax.f32 %v570_v55, 0.0 }
 0x23a   :  { %v1638_v51 = vadd.f32 %v2824_v42, %v1637_v50  ;;  %v1105_v52 = vpop.f32.mrf.mxu1 }
 0x23b   :  { %v1106_v53 = vadd.f32 %v2720_v9, %v1105_v52  ;;  %v2283_v61 = vpop.eup %2282 }
 0x23c   :  { %1925 = vst.msk [vmem:[%s4116_s7 + $0x90] sm:$0xff] %vm1906_vm1, %v1638_v51 }
 0x23d   :  { %2284 = vtanh.f32 %v1106_v53 }
 0x23e   :  { %v571_v56 = vpop.f32.mrf.mxu0 }
 0x23f   :  { %v572_v57 = vadd.f32 %v2964_v54, %v571_v56  ;;  %v123_v56 = vld [vmem:[%s4110_s0 + $0x300] sm:$0xff] }
 0x241   :  { %v803_v59 = vmax.f32 %v572_v57, 0.0  ;;  %v1639_v60 = vpop.f32.mrf.mxu2  ;;  %v124_v57 = vld [vmem:[%s4110_s0 + $0x308] sm:$0xff] }
 0x242   :  { %v1640_v38 = vadd.f32 %v2824_v42, %v1639_v60  ;;  %v1108_v62 = vpop.f32.mrf.mxu1 }
 0x243   :  { %v2285_v1 = vpop.eup %2284  ;;  %v900_v2 = vpack.c.bf16 %v803_v59, %v802_v58  ;;  %v1109_v6 = vadd.f32 %v2720_v9, %v1108_v62  ;;  %v200_v59 = vpack.c.bf16 %v124_v57, %v123_v56 }
 0x244   :  { %1926 = vst.msk [vmem:[%s4116_s7 + $0x98] sm:$0xff] %vm1906_vm1, %v1640_v38  ;;  %v1470_v3 = vpack.c.bf16 %v2285_v1, %v2283_v61  ;;  %v2462_v38 = vld [vmem:[%s4114_s5 + $0x38] sm:$0xff] }
 0x245   :  { %1147 = vmatmul.bf16.gmra.mxu1 %v900_v2  ;;  %2286 = vtanh.f32 %v1109_v6  ;;  %2092 = vmatmul.msk.bf16.vlgmr.msra.gmra.mxu3 %vm235_vm0, %v200_v59  ;;  %v106_v6 = vld [vmem:[%s4110_s0 + $0x278] sm:$0xff] }
 0x246   :  { %v574_v5 = vpop.f32.mrf.mxu0  ;;  %1681 = vmatmul.bf16.gmra.mxu2 %v1470_v3  ;;  %2199 = vmatpush.bf16.msra.mxu3 %v2462_v38 }
 0x247   :  { %v575_v12 = vadd.f32 %v2964_v54, %v574_v5  ;;  %v105_v5 = vld [vmem:[%s4110_s0 + $0x270] sm:$0xff] }
 0x249   :  { %2080 = vmatmul.msk.bf16.gmra.mxu0 %vm235_vm0, %v188_v4  ;;  %v1642_v7 = vpop.f32.mrf.mxu2  ;;  %v804_v15 = vmax.f32 %v575_v12, 0.0  ;;  %v191_v12 = vpack.c.bf16 %v106_v6, %v105_v5 }
 0x24a   :  { %v1643_v8 = vadd.f32 %v2824_v42, %v1642_v7  ;;  %v1110_v10 = vpop.f32.mrf.mxu1  ;;  %v2463_v7 = vld [vmem:[%s4114_s5 + $0x30] sm:$0xff] }
 0x24b   :  { %v1111_v11 = vadd.f32 %v2720_v9, %v1110_v10  ;;  %v2287_v18 = vpop.eup %2286  ;;  %v101_v9 = vld [vmem:[%s4110_s0 + $0x250] sm:$0xff]  ;;  %2200 = vmatpush.bf16.msra.mxu3 %v2463_v7 }
 0x24c   :  { %1927 = vst.msk [vmem:[%s4116_s7 + $0xa0] sm:$0xff] %vm1906_vm1, %v1643_v8  ;;  %v189_v25 = vpack.c.bf16 %v102_v21, %v101_v9  ;;  %v2465_v9 = vld [vmem:[%s4114_s5 + $0x20] sm:$0xff] }
 0x24d   :  { %2288 = vtanh.f32 %v1111_v11 }
 0x24e   :  { %v576_v13 = vpop.f32.mrf.mxu0 }
 0x24f   :  { %v577_v14 = vadd.f32 %v2964_v54, %v576_v13 }
 0x251   :  { %v805_v16 = vmax.f32 %v577_v14, 0.0  ;;  %v1644_v17 = vpop.f32.mrf.mxu2  ;;  %v2464_v14 = vld [vmem:[%s4114_s5 + $0x28] sm:$0xff] }
 0x252   :  { %v1645_v19 = vadd.f32 %v2824_v42, %v1644_v17  ;;  %v1113_v20 = vpop.f32.mrf.mxu1  ;;  %2201 = vmatpush.bf16.msra.mxu3 %v2464_v14 }
 0x253   :  { %v2289_v22 = vpop.eup %2288  ;;  %v901_v23 = vpack.c.bf16 %v805_v16, %v804_v15  ;;  %v1114_v28 = vadd.f32 %v3065_v27, %v1113_v20  ;;  %v126_v20 = vld [vmem:[%s4110_s0 + $0x318] sm:$0xff] }
 0x254   :  { %1928 = vst.msk [vmem:[%s4116_s7 + $0xa8] sm:$0xff] %vm1906_vm1, %v1645_v19  ;;  %v1471_v24 = vpack.c.bf16 %v2289_v22, %v2287_v18  ;;  %v125_v19 = vld [vmem:[%s4110_s0 + $0x310] sm:$0xff] }
 0x255   :  { %1152 = vmatmul.bf16.gmra.mxu1 %v901_v23  ;;  %2290 = vtanh.f32 %v1114_v28  ;;  %v201_v22 = vpack.c.bf16 %v126_v20, %v125_v19 }
 0x256   :  { %v579_v26 = vpop.f32.mrf.mxu0  ;;  %1686 = vmatmul.bf16.gmra.mxu2 %v1471_v24  ;;  %2202 = vmatpush.bf16.msra.mxu3 %v2465_v9 }
 0x257   :  { %v580_v33 = vadd.f32 %v2964_v54, %v579_v26  ;;  %2093 = vmatmul.msk.bf16.gmra.mxu3 %vm235_vm0, %v201_v22 }
 0x259   :  { %2081 = vmatmul.msk.bf16.gmra.mxu0 %vm235_vm0, %v189_v25  ;;  %v1647_v29 = vpop.f32.mrf.mxu2  ;;  %v806_v36 = vmax.f32 %v580_v33, 0.0  ;;  %v2466_v25 = vld [vmem:[%s4114_s5 + $0x18] sm:$0xff] }
 0x25a   :  { %v1648_v30 = vadd.f32 %v2824_v42, %v1647_v29  ;;  %v1115_v31 = vpop.f32.mrf.mxu1  ;;  %2203 = vmatpush.bf16.msra.mxu3 %v2466_v25 }
 0x25b   :  { %v1116_v32 = vadd.f32 %v3065_v27, %v1115_v31  ;;  %v2291_v40 = vpop.eup %2290 }
 0x25c   :  { %1929 = vst.msk [vmem:[%s4116_s7 + $0xb0] sm:$0xff] %vm1906_vm1, %v1648_v30 }
 0x25d   :  { %2292 = vtanh.f32 %v1116_v32 }
 0x25e   :  { %v581_v34 = vpop.f32.mrf.mxu0 }
 0x25f   :  { %v582_v35 = vadd.f32 %v2964_v54, %v581_v34  ;;  %v107_v34 = vld [vmem:[%s4110_s0 + $0x280] sm:$0xff] }
 0x261   :  { %v807_v37 = vmax.f32 %v582_v35, 0.0  ;;  %v1649_v39 = vpop.f32.mrf.mxu2  ;;  %v108_v35 = vld [vmem:[%s4110_s0 + $0x288] sm:$0xff] }
 0x262   :  { %v1650_v41 = vadd.f32 %v2824_v42, %v1649_v39  ;;  %v1118_v43 = vpop.f32.mrf.mxu1 }
 0x263   :  { %v2293_v46 = vpop.eup %2292  ;;  %v902_v47 = vpack.c.bf16 %v807_v37, %v806_v36  ;;  %v1119_v51 = vadd.f32 %v3065_v27, %v1118_v43  ;;  %v2467_v36 = vld [vmem:[%s4114_s5 + $0x10] sm:$0xff] }
 0x264   :  { %1930 = vst.msk [vmem:[%s4116_s7 + $0xb8] sm:$0xff] %vm1906_vm1, %v1650_v41  ;;  %v1472_v48 = vpack.c.bf16 %v2293_v46, %v2291_v40  ;;  %2204 = vmatpush.bf16.msra.mxu3 %v2467_v36  ;;  %v192_v41 = vpack.c.bf16 %v108_v35, %v107_v34  ;;  %v131_v35 = vld [vmem:[%s4110_s0 + $0x340] sm:$0xff]  ;;  %v132_v36 = vld [vmem:[%s4110_s0 + $0x348] sm:$0xff] }
 0x265   :  { %1157 = vmatmul.bf16.gmra.mxu1 %v902_v47  ;;  %2294 = vtanh.f32 %v1119_v51  ;;  %v2469_v51 = vld [vmem:[%s4114_s5] sm:$0xff] }
 0x266   :  { %v584_v50 = vpop.f32.mrf.mxu0  ;;  %1691 = vmatmul.bf16.gmra.mxu2 %v1472_v48 }
 0x267   :  { %v585_v60 = vadd.f32 %v2964_v54, %v584_v50  ;;  %v128_v50 = vld [vmem:[%s4110_s0 + $0x328] sm:$0xff] }
 0x268   :  { %2205 = vmatpush.bf16.msra.mxu3 %v2468_v44 }
 0x269   :  { %2082 = vmatmul.msk.bf16.gmra.mxu0 %vm235_vm0, %v190_v49  ;;  %v1652_v52 = vpop.f32.mrf.mxu2  ;;  %v808_v63 = vmax.f32 %v585_v60, 0.0  ;;  %v127_v49 = vld [vmem:[%s4110_s0 + $0x320] sm:$0xff] }
 0x26a   :  { %v1653_v53 = vadd.f32 %v2824_v42, %v1652_v52  ;;  %v1120_v55 = vpop.f32.mrf.mxu1 }
 0x26b   :  { %v1121_v58 = vadd.f32 %v3065_v27, %v1120_v55  ;;  %v2295_v2 = vpop.eup %2294 }
 0x26c   :  { %1931 = vst.msk [vmem:[%s4116_s7 + $0xc0] sm:$0xff] %vm1906_vm1, %v1653_v53  ;;  %2206 = vmatpush.bf16.msra.mxu3 %v2469_v51  ;;  %v202_v53 = vpack.c.bf16 %v128_v50, %v127_v49  ;;  %v113_v50 = vld [vmem:[%s4110_s0 + $0x2b0] sm:$0xff]  ;;  %v114_v51 = vld [vmem:[%s4110_s0 + $0x2b8] sm:$0xff] }
 0x26d   :  { %2296 = vtanh.f32 %v1121_v58 }
 0x26e   :  { %v586_v61 = vpop.f32.mrf.mxu0  ;;  %2094 = vmatmul.msk.bf16.gmra.mxu3 %vm235_vm0, %v202_v53 }
 0x26f   :  { %v587_v62 = vadd.f32 %v2964_v54, %v586_v61 }
 0x271   :  { %v809_v0 = vmax.f32 %v587_v62, 0.0  ;;  %v1654_v1 = vpop.f32.mrf.mxu2 }
 0x272   :  { %v1655_v3 = vadd.f32 %v2824_v42, %v1654_v1  ;;  %v1123_v4 = vpop.f32.mrf.mxu1 }
 0x273   :  { %v2297_v8 = vpop.eup %2296  ;;  %v903_v10 = vpack.c.bf16 %v809_v0, %v808_v63  ;;  %v1124_v15 = vadd.f32 %v3065_v27, %v1123_v4  ;;  %v109_v63 = vld [vmem:[%s4110_s0 + $0x290] sm:$0xff]  ;;  %v110_v0 = vld [vmem:[%s4110_s0 + $0x298] sm:$0xff] }
 0x274   :  { %1932 = vst.msk [vmem:[%s4116_s7 + $0xc8] sm:$0xff] %vm1906_vm1, %v1655_v3  ;;  %v1473_v11 = vpack.c.bf16 %v2297_v8, %v2295_v2  ;;  %v193_v4 = vpack.c.bf16 %v110_v0, %v109_v63 }
 0x275   :  { %1162 = vmatmul.bf16.gmra.mxu1 %v903_v10  ;;  %2298 = vtanh.f32 %v1124_v15 }
 0x276   :  { %v589_v13 = vpop.f32.mrf.mxu0  ;;  %1696 = vmatmul.bf16.gmra.mxu2 %v1473_v11  ;;  %v129_v11 = vld [vmem:[%s4110_s0 + $0x330] sm:$0xff] }
 0x277   :  { %v590_v23 = vadd.f32 %v2964_v54, %v589_v13 }
 0x279   :  { %2083 = vmatmul.msk.bf16.gmra.mxu0 %vm235_vm0, %v191_v12  ;;  %v1657_v16 = vpop.f32.mrf.mxu2  ;;  %v810_v28 = vmax.f32 %v590_v23, 0.0  ;;  %v130_v12 = vld [vmem:[%s4110_s0 + $0x338] sm:$0xff]  ;;  %v111_v23 = vld [vmem:[%s4110_s0 + $0x2a0] sm:$0xff] }
 0x27a   :  { %v1658_v17 = vadd.f32 %v2824_v42, %v1657_v16  ;;  %v1125_v18 = vpop.f32.mrf.mxu1  ;;  %v203_v14 = vpack.c.bf16 %v130_v12, %v129_v11  ;;  %v115_v11 = vld [vmem:[%s4110_s0 + $0x2c0] sm:$0xff]  ;;  %v116_v12 = vld [vmem:[%s4110_s0 + $0x2c8] sm:$0xff] }
 0x27b   :  { %v1126_v21 = vadd.f32 %v3065_v27, %v1125_v18  ;;  %v2299_v31 = vpop.eup %2298 }
 0x27c   :  { %1933 = vst.msk [vmem:[%s4116_s7 + $0xd0] sm:$0xff] %vm1906_vm1, %v1658_v17 }
 0x27d   :  { %2300 = vtanh.f32 %v1126_v21 }
 0x27e   :  { %v591_v24 = vpop.f32.mrf.mxu0  ;;  %2095 = vmatmul.msk.bf16.gmra.mxu3 %vm235_vm0, %v203_v14 }
 0x27f   :  { %v592_v26 = vadd.f32 %v2964_v54, %v591_v24  ;;  %v112_v24 = vld [vmem:[%s4110_s0 + $0x2a8] sm:$0xff] }
 0x281   :  { %v811_v29 = vmax.f32 %v592_v26, 0.0  ;;  %v1659_v30 = vpop.f32.mrf.mxu2 }
 0x282   :  { %v1660_v32 = vadd.f32 %v2824_v42, %v1659_v30  ;;  %v1128_v33 = vpop.f32.mrf.mxu1 }
 0x283   :  { %v2301_v37 = vpop.eup %2300  ;;  %v904_v39 = vpack.c.bf16 %v811_v29, %v810_v28  ;;  %v1129_v45 = vadd.f32 %v3065_v27, %v1128_v33  ;;  %v194_v29 = vpack.c.bf16 %v112_v24, %v111_v23 }
 0x284   :  { %1934 = vst.msk [vmem:[%s4116_s7 + $0xd8] sm:$0xff] %vm1906_vm1, %v1660_v32  ;;  %v1474_v40 = vpack.c.bf16 %v2301_v37, %v2299_v31 }
 0x285   :  { %1167 = vmatmul.bf16.gmra.mxu1 %v904_v39  ;;  %2302 = vtanh.f32 %v1129_v45  ;;  %v204_v39 = vpack.c.bf16 %v132_v36, %v131_v35  ;;  %v117_v35 = vld [vmem:[%s4110_s0 + $0x2d0] sm:$0xff]  ;;  %v118_v36 = vld [vmem:[%s4110_s0 + $0x2d8] sm:$0xff] }
 0x286   :  { %v594_v43 = vpop.f32.mrf.mxu0  ;;  %1701 = vmatmul.bf16.gmra.mxu2 %v1474_v40 }
 0x287   :  { %v595_v55 = vadd.f32 %v2964_v54, %v594_v43 }
 0x289   :  { %2084 = vmatmul.msk.bf16.gmra.mxu0 %vm235_vm0, %v192_v41  ;;  %v1662_v46 = vpop.f32.mrf.mxu2  ;;  %v812_v58 = vmax.f32 %v595_v55, 0.0 }
 0x28a   :  { %v1663_v47 = vadd.f32 %v2824_v42, %v1662_v46  ;;  %v1130_v48 = vpop.f32.mrf.mxu1 }
 0x28b   :  { %v1131_v52 = vadd.f32 %v3065_v27, %v1130_v48  ;;  %v2303_v61 = vpop.eup %2302 }
 0x28c   :  { %1935 = vst.msk [vmem:[%s4116_s7 + $0xe0] sm:$0xff] %vm1906_vm1, %v1663_v47 }
 0x28d   :  { %2304 = vtanh.f32 %v1131_v52 }
 0x28e   :  { %v596_v56 = vpop.f32.mrf.mxu0  ;;  %2096 = vmatmul.msk.bf16.gmra.mxu3 %vm235_vm0, %v204_v39 }
 0x28f   :  { %v597_v57 = vadd.f32 %v2964_v54, %v596_v56  ;;  %v195_v56 = vpack.c.bf16 %v114_v51, %v113_v50 }
 0x291   :  { %v813_v59 = vmax.f32 %v597_v57, 0.0  ;;  %v1664_v60 = vpop.f32.mrf.mxu2 }
 0x292   :  { %v1665_v38 = vadd.f32 %v2824_v42, %v1664_v60  ;;  %v1133_v62 = vpop.f32.mrf.mxu1 }
 0x293   :  { %v2305_v1 = vpop.eup %2304  ;;  %v905_v2 = vpack.c.bf16 %v813_v59, %v812_v58  ;;  %v1134_v6 = vadd.f32 %v3065_v27, %v1133_v62  ;;  %v134_v62 = vld [vmem:[%s4110_s0 + $0x358] sm:$0xff] }
 0x294   :  { %1936 = vst.msk [vmem:[%s4116_s7 + $0xe8] sm:$0xff] %vm1906_vm1, %v1665_v38  ;;  %v1475_v3 = vpack.c.bf16 %v2305_v1, %v2303_v61  ;;  %v133_v38 = vld [vmem:[%s4110_s0 + $0x350] sm:$0xff] }
 0x295   :  { %1172 = vmatmul.bf16.gmra.mxu1 %v905_v2  ;;  %2306 = vtanh.f32 %v1134_v6  ;;  %v205_v0 = vpack.c.bf16 %v134_v62, %v133_v38  ;;  %v119_v38 = vld [vmem:[%s4110_s0 + $0x2e0] sm:$0xff]  ;;  %v120_v62 = vld [vmem:[%s4110_s0 + $0x2e8] sm:$0xff] }
 0x296   :  { %v599_v5 = vpop.f32.mrf.mxu0  ;;  %1706 = vmatmul.bf16.gmra.mxu2 %v1475_v3 }
 0x297   :  { %v600_v15 = vadd.f32 %v2964_v54, %v599_v5 }
 0x299   :  { %2085 = vmatmul.msk.bf16.gmra.mxu0 %vm235_vm0, %v193_v4  ;;  %v1667_v7 = vpop.f32.mrf.mxu2  ;;  %v814_v18 = vmax.f32 %v600_v15, 0.0 }
 0x29a   :  { %v1668_v8 = vadd.f32 %v2824_v42, %v1667_v7  ;;  %v1135_v10 = vpop.f32.mrf.mxu1  ;;  %v3272_v7 = vld [vmem:[%s4115_s6] ss:$0 sm:$0xff] }
 0x29b   :  { %v1136_v13 = vadd.f32 %v3065_v27, %v1135_v10  ;;  %v2307_v9 = vpop.eup %2306 }
 0x29c   :  { %1937 = vst.msk [vmem:[%s4116_s7 + $0xf0] sm:$0xff] %vm1906_vm1, %v1668_v8 }
 0x29d   :  { %2308 = vtanh.f32 %v1136_v13 }
 0x29e   :  { %v601_v16 = vpop.f32.mrf.mxu0  ;;  %2097 = vmatmul.msk.bf16.gmra.mxu3 %vm235_vm0, %v205_v0 }
 0x29f   :  { %v602_v17 = vadd.f32 %v2964_v54, %v601_v16  ;;  %v196_v16 = vpack.c.bf16 %v116_v12, %v115_v11 }
 0x2a1   :  { %v815_v19 = vmax.f32 %v602_v17, 0.0  ;;  %v1669_v20 = vpop.f32.mrf.mxu2 }
 0x2a2   :  { %v1670_v21 = vadd.f32 %v2824_v42, %v1669_v20  ;;  %v1138_v22 = vpop.f32.mrf.mxu1 }
 0x2a3   :  { %v2309_v25 = vpop.eup %2308  ;;  %v906_v26 = vpack.c.bf16 %v815_v19, %v814_v18  ;;  %v1139_v31 = vadd.f32 %v3065_v27, %v1138_v22  ;;  %v136_v22 = vld [vmem:[%s4110_s0 + $0x368] sm:$0xff] }
 0x2a4   :  { %1938 = vst.msk [vmem:[%s4116_s7 + $0xf8] sm:$0xff] %vm1906_vm1, %v1670_v21  ;;  %v1476_v28 = vpack.c.bf16 %v2309_v25, %v2307_v9  ;;  %v135_v21 = vld [vmem:[%s4110_s0 + $0x360] sm:$0xff] }
 0x2a5   :  { %1177 = vmatmul.bf16.gmra.mxu1 %v906_v26  ;;  %2310 = vtanh.f32 %v1139_v31  ;;  %v206_v24 = vpack.c.bf16 %v136_v22, %v135_v21  ;;  %v121_v22 = vld [vmem:[%s4110_s0 + $0x2f0] sm:$0xff] }
 0x2a6   :  { %v604_v30 = vpop.f32.mrf.mxu0  ;;  %1711 = vmatmul.bf16.gmra.mxu2 %v1476_v28 }
 0x2a7   :  { %v605_v40 = vadd.f32 %v2964_v54, %v604_v30 }
 0x2a9   :  { %2086 = vmatmul.msk.bf16.gmra.mxu0 %vm235_vm0, %v194_v29  ;;  %v1672_v32 = vpop.f32.mrf.mxu2  ;;  %v816_v44 = vmax.f32 %v605_v40, 0.0 }
 0x2aa   :  { %v1673_v33 = vadd.f32 %v2824_v42, %v1672_v32  ;;  %v1140_v34 = vpop.f32.mrf.mxu1 }
 0x2ab   :  { %v1141_v37 = vadd.f32 %v3065_v27, %v1140_v34  ;;  %v2311_v47 = vpop.eup %2310 }
 0x2ac   :  { %1939 = vst.msk [vmem:[%s4116_s7 + $0x100] sm:$0xff] %vm1906_vm1, %v1673_v33 }
 0x2ad   :  { %2312 = vtanh.f32 %v1141_v37 }
 0x2ae   :  { %v606_v41 = vpop.f32.mrf.mxu0  ;;  %2098 = vmatmul.msk.bf16.gmra.mxu3 %vm235_vm0, %v206_v24 }
 0x2af   :  { %v607_v43 = vadd.f32 %v2964_v54, %v606_v41  ;;  %v197_v41 = vpack.c.bf16 %v118_v36, %v117_v35 }
 0x2b1   :  { %v817_v45 = vmax.f32 %v607_v43, 0.0  ;;  %v1674_v46 = vpop.f32.mrf.mxu2 }
 0x2b2   :  { %v1675_v48 = vadd.f32 %v2824_v42, %v1674_v46  ;;  %v1143_v49 = vpop.f32.mrf.mxu1 }
 0x2b3   :  { %v2313_v52 = vpop.eup %2312  ;;  %v907_v53 = vpack.c.bf16 %v817_v45, %v816_v44  ;;  %v1144_v58 = vadd.f32 %v3065_v27, %v1143_v49  ;;  %v138_v49 = vld [vmem:[%s4110_s0 + $0x378] sm:$0xff] }
 0x2b4   :  { %1940 = vst.msk [vmem:[%s4116_s7 + $0x108] sm:$0xff] %vm1906_vm1, %v1675_v48  ;;  %v1477_v55 = vpack.c.bf16 %v2313_v52, %v2311_v47  ;;  %v137_v48 = vld [vmem:[%s4110_s0 + $0x370] sm:$0xff] }
 0x2b5   :  { %1182 = vmatmul.bf16.gmra.mxu1 %v907_v53  ;;  %2314 = vtanh.f32 %v1144_v58  ;;  %v207_v51 = vpack.c.bf16 %v138_v49, %v137_v48 }
 0x2b6   :  { %v609_v57 = vpop.f32.mrf.mxu0  ;;  %1716 = vmatmul.bf16.gmra.mxu2 %v1477_v55 }
 0x2b9   :  { %2087 = vmatmul.msk.bf16.gmra.mxu0 %vm235_vm0, %v195_v56  ;;  %v1677_v59 = vpop.f32.mrf.mxu2 }
 0x2ba   :  { %v1678_v60 = vadd.f32 %v2824_v42, %v1677_v59  ;;  %v1145_v61 = vpop.f32.mrf.mxu1  ;;  %v610_v42 = vadd.f32 %v2964_v54, %v609_v57 }
 0x2bb   :  { %v1146_v63 = vadd.f32 %v3065_v27, %v1145_v61  ;;  %v2315_v6 = vpop.eup %2314 }
 0x2bc   :  { %1941 = vst.msk [vmem:[%s4116_s7 + $0x110] sm:$0xff] %vm1906_vm1, %v1678_v60  ;;  %v818_v3 = vmax.f32 %v610_v42, 0.0 }
 0x2bd   :  { %2316 = vtanh.f32 %v1146_v63 }
 0x2be   :  { %v611_v1 = vpop.f32.mrf.mxu0  ;;  %2099 = vmatmul.msk.bf16.gmra.mxu3 %vm235_vm0, %v207_v51 }
 0x2bf   :  { %v612_v2 = vadd.f32 %v2964_v54, %v611_v1  ;;  %v198_v1 = vpack.c.bf16 %v120_v62, %v119_v38 }
 0x2c1   :  { %v819_v4 = vmax.f32 %v612_v2, 0.0  ;;  %v1679_v5 = vpop.f32.mrf.mxu2 }
 0x2c2   :  { %v1680_v8 = vadd.f32 %v3272_v7, %v1679_v5  ;;  %v1148_v10 = vpop.f32.mrf.mxu1 }
 0x2c3   :  { %v2317_v13 = vpop.eup %2316  ;;  %v908_v14 = vpack.c.bf16 %v819_v4, %v818_v3  ;;  %v1149_v18 = vadd.f32 %v3065_v27, %v1148_v10  ;;  %v140_v10 = vld [vmem:[%s4110_s0 + $0x388] sm:$0xff] }
 0x2c4   :  { %1942 = vst.msk [vmem:[%s4116_s7 + $0x118] sm:$0xff] %vm1906_vm1, %v1680_v8  ;;  %v1478_v15 = vpack.c.bf16 %v2317_v13, %v2315_v6  ;;  %v139_v8 = vld [vmem:[%s4110_s0 + $0x380] sm:$0xff] }
 0x2c5   :  { %1187 = vmatmul.bf16.gmra.mxu1 %v908_v14  ;;  %2318 = vtanh.f32 %v1149_v18  ;;  %v208_v12 = vpack.c.bf16 %v140_v10, %v139_v8 }
 0x2c6   :  { %v614_v17 = vpop.f32.mrf.mxu0  ;;  %1721 = vmatmul.bf16.gmra.mxu2 %v1478_v15 }
 0x2c7   :  { %v615_v25 = vadd.f32 %v2964_v54, %v614_v17 }
 0x2c9   :  { %2088 = vmatmul.msk.bf16.gmra.mxu0 %vm235_vm0, %v196_v16  ;;  %v1682_v19 = vpop.f32.mrf.mxu2  ;;  %v820_v29 = vmax.f32 %v615_v25, 0.0  ;;  %v674_v16 = vpop.f32.mrf.mxu3 }
 0x2ca   :  { %v1683_v20 = vadd.f32 %v3272_v7, %v1682_v19  ;;  %v1150_v9 = vpop.f32.mrf.mxu1 }
 0x2cb   :  { %v1151_v23 = vadd.f32 %v3065_v27, %v1150_v9  ;;  %v2319_v32 = vpop.eup %2318 }
 0x2cc   :  { %1943 = vst.msk [vmem:[%s4116_s7 + $0x120] sm:$0xff] %vm1906_vm1, %v1683_v20 }
 0x2cd   :  { %2320 = vtanh.f32 %v1151_v23  ;;  %v122_v23 = vld [vmem:[%s4110_s0 + $0x2f8] sm:$0xff] }
 0x2ce   :  { %v616_v26 = vpop.f32.mrf.mxu0  ;;  %2100 = vmatmul.msk.bf16.gmra.mxu3 %vm235_vm0, %v208_v12 }
 0x2cf   :  { %v617_v28 = vadd.f32 %v2964_v54, %v616_v26 }
 0x2d1   :  { %v821_v30 = vmax.f32 %v617_v28, 0.0  ;;  %v1684_v31 = vpop.f32.mrf.mxu2  ;;  %v199_v28 = vpack.c.bf16 %v122_v23, %v121_v22 }
 0x2d2   :  { %v1685_v33 = vadd.f32 %v3272_v7, %v1684_v31  ;;  %v1153_v34 = vpop.f32.mrf.mxu1 }
 0x2d3   :  { %v2321_v37 = vpop.eup %2320  ;;  %v909_v39 = vpack.c.bf16 %v821_v30, %v820_v29  ;;  %v1154_v44 = vadd.f32 %v3065_v27, %v1153_v34  ;;  %v675_v29 = vadd.f32 %v2964_v54, %v674_v16 }
 0x2d4   :  { %1944 = vst.msk [vmem:[%s4116_s7 + $0x128] sm:$0xff] %vm1906_vm1, %v1685_v33  ;;  %v1479_v40 = vpack.c.bf16 %v2321_v37, %v2319_v32  ;;  %v676_v32 = vpop.f32.mrf.mxu3 }
 0x2d5   :  { %1192 = vmatmul.bf16.gmra.mxu1 %v909_v39  ;;  %2322 = vtanh.f32 %v1154_v44  ;;  %v844_v34 = vmax.f32 %v675_v29, 0.0  ;;  %v677_v35 = vadd.f32 %v2964_v54, %v676_v32  ;;  %v141_v39 = vld [vmem:[%s4110_s0 + $0x390] sm:$0xff] }
 0x2d6   :  { %v619_v43 = vpop.f32.mrf.mxu0  ;;  %1726 = vmatmul.bf16.gmra.mxu2 %v1479_v40  ;;  %v142_v40 = vld [vmem:[%s4110_s0 + $0x398] sm:$0xff] }
 0x2d7   :  { %v620_v52 = vadd.f32 %v2964_v54, %v619_v43  ;;  %v845_v43 = vmax.f32 %v677_v35, 0.0  ;;  %v209_v44 = vpack.c.bf16 %v142_v40, %v141_v39 }
 0x2d9   :  { %2089 = vmatmul.msk.bf16.gmra.mxu0 %vm235_vm0, %v197_v41  ;;  %v1687_v45 = vpop.f32.mrf.mxu2  ;;  %v822_v56 = vmax.f32 %v620_v52, 0.0 }
 0x2da   :  { %v1688_v46 = vadd.f32 %v3272_v7, %v1687_v45  ;;  %v1155_v47 = vpop.f32.mrf.mxu1 }
 0x2db   :  { %v1156_v50 = vadd.f32 %v3065_v27, %v1155_v47  ;;  %v2323_v59 = vpop.eup %2322 }
 0x2dc   :  { %1945 = vst.msk [vmem:[%s4116_s7 + $0x130] sm:$0xff] %vm1906_vm1, %v1688_v46  ;;  %v3387_v46 = vpack.c.bf16 %v845_v43, %v844_v34  ;;  %v679_v49 = vpop.f32.mrf.mxu3  ;;  %v146_v34 = vld [vmem:[%s4110_s0 + $0x3b8] sm:$0xff] }
 0x2dd   :  { %2324 = vtanh.f32 %v1156_v50 }
 0x2de   :  { %v621_v53 = vpop.f32.mrf.mxu0  ;;  %2101 = vmatmul.msk.bf16.gmra.mxu3 %vm235_vm0, %v209_v44 }
 0x2df   :  { %v622_v55 = vadd.f32 %v2964_v54, %v621_v53 }
 0x2e1   :  { %v823_v57 = vmax.f32 %v622_v55, 0.0  ;;  %v1689_v58 = vpop.f32.mrf.mxu2 }
 0x2e2   :  { %v1690_v60 = vadd.f32 %v3272_v7, %v1689_v58  ;;  %v1158_v61 = vpop.f32.mrf.mxu1 }
 0x2e3   :  { %v2325_v63 = vpop.eup %2324  ;;  %v910_v0 = vpack.c.bf16 %v823_v57, %v822_v56  ;;  %v1159_v3 = vadd.f32 %v3065_v27, %v1158_v61 }
 0x2e4   :  { %1946 = vst.msk [vmem:[%s4116_s7 + $0x138] sm:$0xff] %vm1906_vm1, %v1690_v60  ;;  %v1480_v42 = vpack.c.bf16 %v2325_v63, %v2323_v59  ;;  %v680_v60 = vadd.f32 %v2964_v54, %v679_v49  ;;  %v681_v62 = vpop.f32.mrf.mxu3 }
 0x2e5   :  { %1197 = vmatmul.bf16.gmra.mxu1 %v910_v0  ;;  %2326 = vtanh.f32 %v1159_v3  ;;  %v143_v3 = vld [vmem:[%s4110_s0 + $0x3a0] sm:$0xff] }
 0x2e6   :  { %v624_v2 = vpop.f32.mrf.mxu0  ;;  %1731 = vmatmul.bf16.gmra.mxu2 %v1480_v42  ;;  %v846_v0 = vmax.f32 %v680_v60, 0.0  ;;  %v682_v42 = vadd.f32 %v2964_v54, %v681_v62  ;;  %v148_v62 = vld [vmem:[%s4110_s0 + $0x3c8] sm:$0xff] }
 0x2e7   :  { %v625_v13 = vadd.f32 %v2964_v54, %v624_v2 }
 0x2e9   :  { %2090 = vmatmul.msk.bf16.gmra.mxu0 %vm235_vm0, %v198_v1  ;;  %v1692_v4 = vpop.f32.mrf.mxu2  ;;  %v824_v17 = vmax.f32 %v625_v13, 0.0 }
 0x2ea   :  { %v1693_v5 = vadd.f32 %v3272_v7, %v1692_v4  ;;  %v1160_v6 = vpop.f32.mrf.mxu1  ;;  %v144_v4 = vld [vmem:[%s4110_s0 + $0x3a8] sm:$0xff] }
 0x2eb   :  { %v1161_v11 = vadd.f32 %v3065_v27, %v1160_v6  ;;  %v2327_v20 = vpop.eup %2326  ;;  %v847_v6 = vmax.f32 %v682_v42, 0.0  ;;  %v210_v8 = vpack.c.bf16 %v144_v4, %v143_v3 }
 0x2ec   :  { %1947 = vst.msk [vmem:[%s4116_s7 + $0x140] sm:$0xff] %vm1906_vm1, %v1693_v5 }
 0x2ed   :  { %2328 = vtanh.f32 %v1161_v11  ;;  %v3412_v11 = vpack.c.bf16 %v847_v6, %v846_v0 }
 0x2ee   :  { %v626_v14 = vpop.f32.mrf.mxu0  ;;  %2102 = vmatmul.msk.bf16.gmra.mxu3 %vm235_vm0, %v210_v8 }
 0x2ef   :  { %v627_v15 = vadd.f32 %v2964_v54, %v626_v14 }
 0x2f1   :  { %v825_v18 = vmax.f32 %v627_v15, 0.0  ;;  %v1694_v19 = vpop.f32.mrf.mxu2  ;;  %v684_v14 = vpop.f32.mrf.mxu3 }
 0x2f2   :  { %v1695_v9 = vadd.f32 %v3272_v7, %v1694_v19  ;;  %v1163_v21 = vpop.f32.mrf.mxu1 }
 0x2f3   :  { %v2329_v24 = vpop.eup %2328  ;;  %v911_v25 = vpack.c.bf16 %v825_v18, %v824_v17  ;;  %v1164_v31 = vadd.f32 %v3065_v27, %v1163_v21 }
 0x2f4   :  { %1948 = vst.msk [vmem:[%s4116_s7 + $0x148] sm:$0xff] %vm1906_vm1, %v1695_v9  ;;  %v1481_v26 = vpack.c.bf16 %v2329_v24, %v2327_v20 }
 0x2f5   :  { %1202 = vmatmul.bf16.gmra.mxu1 %v911_v25  ;;  %2330 = vtanh.f32 %v1164_v31 }
 0x2f6   :  { %v629_v30 = vpop.f32.mrf.mxu0  ;;  %1736 = vmatmul.bf16.gmra.mxu2 %v1481_v26 }
 0x2f7   :  { %v630_v45 = vadd.f32 %v2964_v54, %v629_v30 }
 0x2f9   :  { %2091 = vmatmul.msk.bf16.gmra.mxu0 %vm235_vm0, %v199_v28  ;;  %v1697_v33 = vpop.f32.mrf.mxu2  ;;  %v826_v50 = vmax.f32 %v630_v45, 0.0  ;;  %v686_v26 = vpop.f32.mrf.mxu3 }
 0x2fa   :  { %v1698_v36 = vadd.f32 %v3272_v7, %v1697_v33  ;;  %v1165_v37 = vpop.f32.mrf.mxu1  ;;  %v145_v33 = vld [vmem:[%s4110_s0 + $0x3b0] sm:$0xff] }
 0x2fb   :  { %v1166_v41 = vadd.f32 %v3065_v27, %v1165_v37  ;;  %v2331_v53 = vpop.eup %2330  ;;  %v211_v37 = vpack.c.bf16 %v146_v34, %v145_v33 }
 0x2fc   :  { %1949 = vst.msk [vmem:[%s4116_s7 + $0x150] sm:$0xff] %vm1906_vm1, %v1698_v36 }
 0x2fd   :  { %2332 = vtanh.f32 %v1166_v41 }
 0x2fe   :  { %v631_v47 = vpop.f32.mrf.mxu0  ;;  %2103 = vmatmul.msk.bf16.gmra.mxu3 %vm235_vm0, %v211_v37 }
 0x2ff   :  { %v632_v48 = vadd.f32 %v2964_v54, %v631_v47 }
 0x301   :  { %v827_v51 = vmax.f32 %v632_v48, 0.0  ;;  %v1699_v52 = vpop.f32.mrf.mxu2  ;;  %v3445_v44 = vpop.f32.mrf.mxu3 }
 0x302   :  { %v1700_v55 = vadd.f32 %v3272_v7, %v1699_v52  ;;  %v1168_v56 = vpop.f32.mrf.mxu1 }
 0x303   :  { %v2333_v57 = vpop.eup %2332  ;;  %v912_v58 = vpack.c.bf16 %v827_v51, %v826_v50  ;;  %v1169_v38 = vadd.f32 %v3065_v27, %v1168_v56 }
 0x304   :  { %1950 = vst.msk [vmem:[%s4116_s7 + $0x158] sm:$0xff] %vm1906_vm1, %v1700_v55  ;;  %v1482_v59 = vpack.c.bf16 %v2333_v57, %v2331_v53 }
 0x305   :  { %1207 = vmatmul.bf16.gmra.mxu1 %v912_v58  ;;  %2334 = vtanh.f32 %v1169_v38  ;;  %v147_v38 = vld [vmem:[%s4110_s0 + $0x3c0] sm:$0xff] }
 0x306   :  { %v634_v61 = vpop.f32.mrf.mxu0  ;;  %1741 = vmatmul.bf16.gmra.mxu2 %v1482_v59  ;;  %v212_v0 = vpack.c.bf16 %v148_v62, %v147_v38 }
 0x307   :  { %v635_v10 = vadd.f32 %v2964_v54, %v634_v61 }
 0x309   :  { %v1702_v63 = vpop.f32.mrf.mxu2  ;;  %v828_v15 = vmax.f32 %v635_v10, 0.0  ;;  %v3453_v58 = vpop.f32.mrf.mxu3 }
 0x30a   :  { %v1703_v1 = vadd.f32 %v3272_v7, %v1702_v63  ;;  %v1170_v2 = vpop.f32.mrf.mxu1 }
 0x30b   :  { %v1171_v5 = vadd.f32 %v3065_v27, %v1170_v2  ;;  %v2335_v18 = vpop.eup %2334 }
 0x30c   :  { %1951 = vst.msk [vmem:[%s4116_s7 + $0x160] sm:$0xff] %vm1906_vm1, %v1703_v1 }
 0x30d   :  { %2336 = vtanh.f32 %v1171_v5 }
 0x30e   :  { %v636_v12 = vpop.f32.mrf.mxu0  ;;  %2104 = vmatmul.msk.bf16.gmra.mxu3 %vm235_vm0, %v212_v0 }
 0x30f   :  { %v637_v13 = vadd.f32 %v2964_v54, %v636_v12  ;;  %v3423_v54 = vld [vmem:[%s4111_s2] ss:$0 sm:$0xff] }
 0x310   :  { %v685_v23 = vadd.f32 %v3423_v54, %v684_v14  ;;  %v687_v30 = vadd.f32 %v3423_v54, %v686_v26 }
 0x311   :  { %v829_v16 = vmax.f32 %v637_v13, 0.0  ;;  %v1704_v17 = vpop.f32.mrf.mxu2  ;;  %v3470_v3 = vpop.f32.mrf.mxu3 }
 0x312   :  { %v1705_v19 = vadd.f32 %v3272_v7, %v1704_v17  ;;  %v1173_v20 = vpop.f32.mrf.mxu1  ;;  %v848_v29 = vmax.f32 %v685_v23, 0.0  ;;  %v849_v36 = vmax.f32 %v687_v30, 0.0 }
 0x313   :  { %v2337_v9 = vpop.eup %2336  ;;  %v913_v21 = vpack.c.bf16 %v829_v16, %v828_v15  ;;  %v1174_v25 = vadd.f32 %v3065_v27, %v1173_v20 }
 0x314   :  { %1952 = vst.msk [vmem:[%s4116_s7 + $0x168] sm:$0xff] %vm1906_vm1, %v1705_v19  ;;  %v1483_v22 = vpack.c.bf16 %v2337_v9, %v2335_v18  ;;  %v3442_v40 = vpack.c.bf16 %v849_v36, %v848_v29 }
 0x315   :  { %1212 = vmatmul.bf16.gmra.mxu1 %v913_v21  ;;  %2338 = vtanh.f32 %v1174_v25  ;;  %v149_v21 = vld [vmem:[%s4110_s0 + $0x3d0] sm:$0xff] }
 0x316   :  { %v639_v24 = vpop.f32.mrf.mxu0  ;;  %1746 = vmatmul.bf16.gmra.mxu2 %v1483_v22  ;;  %v150_v22 = vld [vmem:[%s4110_s0 + $0x3d8] sm:$0xff] }
 0x317   :  { %v640_v39 = vadd.f32 %v3423_v54, %v639_v24  ;;  %v213_v24 = vpack.c.bf16 %v150_v22, %v149_v21 }
 0x319   :  { %v1707_v28 = vpop.f32.mrf.mxu2  ;;  %v830_v45 = vmax.f32 %v640_v39, 0.0  ;;  %v3478_v18 = vpop.f32.mrf.mxu3 }
 0x31a   :  { %v1708_v31 = vadd.f32 %v3272_v7, %v1707_v28  ;;  %v1175_v32 = vpop.f32.mrf.mxu1 }
 0x31b   :  { %v1176_v35 = vadd.f32 %v3065_v27, %v1175_v32  ;;  %v2339_v49 = vpop.eup %2338 }
 0x31c   :  { %1953 = vst.msk [vmem:[%s4116_s7 + $0x170] sm:$0xff] %vm1906_vm1, %v1708_v31 }
 0x31d   :  { %2340 = vtanh.f32 %v1176_v35 }
 0x31e   :  { %v641_v41 = vpop.f32.mrf.mxu0  ;;  %2105 = vmatmul.msk.bf16.gmra.mxu3 %vm235_vm0, %v213_v24 }
 0x31f   :  { %v642_v43 = vadd.f32 %v3423_v54, %v641_v41 }
 0x321   :  { %v831_v47 = vmax.f32 %v642_v43, 0.0  ;;  %v1709_v48 = vpop.f32.mrf.mxu2  ;;  %v3495_v29 = vpop.f32.mrf.mxu3 }
 0x322   :  { %v1710_v50 = vadd.f32 %v3272_v7, %v1709_v48  ;;  %v1178_v51 = vpop.f32.mrf.mxu1 }
 0x323   :  { %v2341_v52 = vpop.eup %2340  ;;  %v914_v53 = vpack.c.bf16 %v831_v47, %v830_v45  ;;  %v1179_v57 = vadd.f32 %v3065_v27, %v1178_v51 }
 0x324   :  { %1954 = vst.msk [vmem:[%s4116_s7 + $0x178] sm:$0xff] %vm1906_vm1, %v1710_v50  ;;  %v1484_v55 = vpack.c.bf16 %v2341_v52, %v2339_v49  ;;  %v151_v50 = vld [vmem:[%s4110_s0 + $0x3e0] sm:$0xff] }
 0x325   :  { %1217 = vmatmul.bf16.gmra.mxu1 %v914_v53  ;;  %2342 = vtanh.f32 %v1179_v57  ;;  %v214_v52 = vpack.c.bf16 %v151_v50, %v151_v50 }
 0x326   :  { %v644_v56 = vpop.f32.mrf.mxu0  ;;  %1751 = vmatmul.bf16.gmra.mxu2 %v1484_v55 }
 0x327   :  { %v645_v42 = vadd.f32 %v3423_v54, %v644_v56 }
 0x329   :  { %v1712_v59 = vpop.f32.mrf.mxu2  ;;  %v832_v4 = vmax.f32 %v645_v42, 0.0  ;;  %v3503_v45 = vpop.f32.mrf.mxu3 }
 0x32a   :  { %v1713_v60 = vadd.f32 %v3272_v7, %v1712_v59  ;;  %v1180_v61 = vpop.f32.mrf.mxu1 }
 0x32b   :  { %v1181_v63 = vadd.f32 %v3065_v27, %v1180_v61  ;;  %v2343_v8 = vpop.eup %2342 }
 0x32c   :  { %1955 = vst.msk [vmem:[%s4116_s7 + $0x180] sm:$0xff] %vm1906_vm1, %v1713_v60 }
 0x32d   :  { %2344 = vtanh.f32 %v1181_v63 }
 0x32e   :  { %v646_v1 = vpop.f32.mrf.mxu0  ;;  %2106 = vmatmul.msk.bf16.gmra.mxu3 %vm235_vm0, %v214_v52 }
 0x32f   :  { %v647_v2 = vadd.f32 %v3423_v54, %v646_v1 }
 0x331   :  { %v833_v5 = vmax.f32 %v647_v2, 0.0  ;;  %v1714_v6 = vpop.f32.mrf.mxu2  ;;  %v3517_v57 = vpop.f32.mrf.mxu3  ;;  %v3527_v2 = vld [vmem:[%s4113_s4] ss:$0 sm:$0xff] }
 0x332   :  { %v1715_v10 = vadd.f32 %v3272_v7, %v1714_v6  ;;  %v1183_v12 = vpop.f32.mrf.mxu1 }
 0x333   :  { %v2345_v13 = vpop.eup %2344  ;;  %v915_v14 = vpack.c.bf16 %v833_v5, %v832_v4  ;;  %v1184_v17 = vadd.f32 %v3065_v27, %v1183_v12 }
 0x334   :  { %1956 = vst.msk [vmem:[%s4116_s7 + $0x188] sm:$0xff] %vm1906_vm1, %v1715_v10  ;;  %v1485_v15 = vpack.c.bf16 %v2345_v13, %v2343_v8 }
 0x335   :  { %1222 = vmatmul.bf16.gmra.mxu1 %v915_v14  ;;  %2346 = vtanh.f32 %v1184_v17 }
 0x336   :  { %v649_v16 = vpop.f32.mrf.mxu0  ;;  %1756 = vmatmul.bf16.gmra.mxu2 %v1485_v15 }
 0x337   :  { %v650_v25 = vadd.f32 %v3423_v54, %v649_v16 }
 0x339   :  { %v1717_v19 = vpop.f32.mrf.mxu2  ;;  %v834_v30 = vmax.f32 %v650_v25, 0.0  ;;  %v3530_v5 = vpop.f32.mrf.mxu3 }
 0x33a   :  { %v1718_v20 = vadd.f32 %v3272_v7, %v1717_v19  ;;  %v1185_v9 = vpop.f32.mrf.mxu1 }
 0x33b   :  { %v1186_v23 = vadd.f32 %v3065_v27, %v1185_v9  ;;  %v2347_v33 = vpop.eup %2346 }
 0x33c   :  { %1957 = vst.msk [vmem:[%s4116_s7 + $0x190] sm:$0xff] %vm1906_vm1, %v1718_v20 }
 0x33d   :  { %2348 = vtanh.f32 %v1186_v23 }
 0x33e   :  { %v651_v26 = vpop.f32.mrf.mxu0 }
 0x33f   :  { %v652_v28 = vadd.f32 %v3423_v54, %v651_v26 }
 0x341   :  { %v835_v31 = vmax.f32 %v652_v28, 0.0  ;;  %v1719_v32 = vpop.f32.mrf.mxu2  ;;  %v3540_v16 = vpop.f32.mrf.mxu3 }
 0x342   :  { %v1720_v34 = vadd.f32 %v3272_v7, %v1719_v32  ;;  %v1188_v35 = vpop.f32.mrf.mxu1 }
 0x343   :  { %v2349_v36 = vpop.eup %2348  ;;  %v916_v37 = vpack.c.bf16 %v835_v31, %v834_v30  ;;  %v1189_v43 = vadd.f32 %v3065_v27, %v1188_v35 }
 0x344   :  { %1958 = vst.msk [vmem:[%s4116_s7 + $0x198] sm:$0xff] %vm1906_vm1, %v1720_v34  ;;  %v1486_v39 = vpack.c.bf16 %v2349_v36, %v2347_v33 }
 0x345   :  { %1227 = vmatmul.bf16.gmra.mxu1 %v916_v37  ;;  %2350 = vtanh.f32 %v1189_v43 }
 0x346   :  { %v654_v41 = vpop.f32.mrf.mxu0  ;;  %1761 = vmatmul.bf16.gmra.mxu2 %v1486_v39 }
 0x347   :  { %v655_v53 = vadd.f32 %v3423_v54, %v654_v41 }
 0x349   :  { %v1722_v47 = vpop.f32.mrf.mxu2  ;;  %v836_v59 = vmax.f32 %v655_v53, 0.0  ;;  %v3548_v30 = vpop.f32.mrf.mxu3 }
 0x34a   :  { %v1723_v48 = vadd.f32 %v3272_v7, %v1722_v47  ;;  %v1190_v49 = vpop.f32.mrf.mxu1 }
 0x34b   :  { %v1191_v51 = vadd.f32 %v3065_v27, %v1190_v49  ;;  %v2351_v61 = vpop.eup %2350 }
 0x34c   :  { %1959 = vst.msk [vmem:[%s4116_s7 + $0x1a0] sm:$0xff] %vm1906_vm1, %v1723_v48 }
 0x34d   :  { %2352 = vtanh.f32 %v1191_v51 }
 0x34e   :  { %v656_v55 = vpop.f32.mrf.mxu0 }
 0x34f   :  { %v657_v56 = vadd.f32 %v3423_v54, %v656_v55 }
 0x351   :  { %v837_v60 = vmax.f32 %v657_v56, 0.0  ;;  %v1724_v27 = vpop.f32.mrf.mxu2  ;;  %v3558_v39 = vpop.f32.mrf.mxu3 }
 0x352   :  { %v1725_v38 = vadd.f32 %v3272_v7, %v1724_v27  ;;  %v1193_v62 = vpop.f32.mrf.mxu1 }
 0x353   :  { %v2353_v63 = vpop.eup %2352  ;;  %v917_v0 = vpack.c.bf16 %v837_v60, %v836_v59  ;;  %v1194_v4 = vadd.f32 %v3527_v2, %v1193_v62 }
 0x354   :  { %1960 = vst.msk [vmem:[%s4116_s7 + $0x1a8] sm:$0xff] %vm1906_vm1, %v1725_v38  ;;  %v1487_v42 = vpack.c.bf16 %v2353_v63, %v2351_v61 }
 0x355   :  { %1232 = vmatmul.bf16.gmra.mxu1 %v917_v0  ;;  %2354 = vtanh.f32 %v1194_v4 }
 0x356   :  { %v659_v1 = vpop.f32.mrf.mxu0  ;;  %1766 = vmatmul.bf16.gmra.mxu2 %v1487_v42 }
 0x357   :  { %v660_v13 = vadd.f32 %v3423_v54, %v659_v1 }
 0x359   :  { %v1727_v6 = vpop.f32.mrf.mxu2  ;;  %v838_v17 = vmax.f32 %v660_v13, 0.0  ;;  %v3566_v59 = vpop.f32.mrf.mxu3 }
 0x35a   :  { %v1728_v8 = vadd.f32 %v3272_v7, %v1727_v6  ;;  %v1195_v10 = vpop.f32.mrf.mxu1 }
 0x35b   :  { %v1196_v12 = vadd.f32 %v3527_v2, %v1195_v10  ;;  %v2355_v9 = vpop.eup %2354 }
 0x35c   :  { %1961 = vst.msk [vmem:[%s4116_s7 + $0x1b0] sm:$0xff] %vm1906_vm1, %v1728_v8 }
 0x35d   :  { %2356 = vtanh.f32 %v1196_v12 }
 0x35e   :  { %v661_v14 = vpop.f32.mrf.mxu0 }
 0x35f   :  { %v662_v15 = vadd.f32 %v3423_v54, %v661_v14 }
 0x361   :  { %v839_v19 = vmax.f32 %v662_v15, 0.0  ;;  %v1729_v20 = vpop.f32.mrf.mxu2  ;;  %v3576_v42 = vpop.f32.mrf.mxu3 }
 0x362   :  { %v1730_v21 = vadd.f32 %v3272_v7, %v1729_v20  ;;  %v1198_v22 = vpop.f32.mrf.mxu1 }
 0x363   :  { %v2357_v23 = vpop.eup %2356  ;;  %v918_v24 = vpack.c.bf16 %v839_v19, %v838_v17  ;;  %v1199_v28 = vadd.f32 %v3527_v2, %v1198_v22 }
 0x364   :  { %1962 = vst.msk [vmem:[%s4116_s7 + $0x1b8] sm:$0xff] %vm1906_vm1, %v1730_v21  ;;  %v1488_v25 = vpack.c.bf16 %v2357_v23, %v2355_v9 }
 0x365   :  { %1237 = vmatmul.bf16.gmra.mxu1 %v918_v24  ;;  %2358 = vtanh.f32 %v1199_v28 }
 0x366   :  { %v664_v26 = vpop.f32.mrf.mxu0  ;;  %1771 = vmatmul.bf16.gmra.mxu2 %v1488_v25 }
 0x367   :  { %v665_v35 = vadd.f32 %v3423_v54, %v664_v26 }
 0x369   :  { %v1732_v31 = vpop.f32.mrf.mxu2  ;;  %v840_v41 = vmax.f32 %v665_v35, 0.0  ;;  %v3584_v19 = vpop.f32.mrf.mxu3 }
 0x36a   :  { %v1733_v32 = vadd.f32 %v3272_v7, %v1732_v31  ;;  %v1200_v33 = vpop.f32.mrf.mxu1 }
 0x36b   :  { %v1201_v34 = vadd.f32 %v3527_v2, %v1200_v33  ;;  %v2359_v48 = vpop.eup %2358 }
 0x36c   :  { %1963 = vst.msk [vmem:[%s4116_s7 + $0x1c0] sm:$0xff] %vm1906_vm1, %v1733_v32 }
 0x36d   :  { %2360 = vtanh.f32 %v1201_v34 }
 0x36e   :  { %v666_v36 = vpop.f32.mrf.mxu0 }
 0x36f   :  { %v667_v37 = vadd.f32 %v3423_v54, %v666_v36 }
 0x371   :  { %v841_v43 = vmax.f32 %v667_v37, 0.0  ;;  %v1734_v47 = vpop.f32.mrf.mxu2  ;;  %v3592_v23 = vpop.f32.mrf.mxu3 }
 0x372   :  { %v1735_v49 = vadd.f32 %v3272_v7, %v1734_v47  ;;  %v1203_v50 = vpop.f32.mrf.mxu1 }
 0x373   :  { %v2361_v51 = vpop.eup %2360  ;;  %v919_v52 = vpack.c.bf16 %v841_v43, %v840_v41  ;;  %v1204_v56 = vadd.f32 %v3527_v2, %v1203_v50 }
 0x374   :  { %1964 = vst.msk [vmem:[%s4116_s7 + $0x1c8] sm:$0xff] %vm1906_vm1, %v1735_v49  ;;  %v1489_v53 = vpack.c.bf16 %v2361_v51, %v2359_v48 }
 0x375   :  { %1242 = vmatmul.bf16.gmra.mxu1 %v919_v52  ;;  %2362 = vtanh.f32 %v1204_v56 }
 0x376   :  { %v669_v55 = vpop.f32.mrf.mxu0  ;;  %1776 = vmatmul.bf16.gmra.mxu2 %v1489_v53 }
 0x377   :  { %v670_v62 = vadd.f32 %v3423_v54, %v669_v55 }
 0x379   :  { %v1737_v60 = vpop.f32.mrf.mxu2  ;;  %v842_v1 = vmax.f32 %v670_v62, 0.0  ;;  %v3601_v34 = vpop.f32.mrf.mxu3 }
 0x37a   :  { %v1738_v27 = vadd.f32 %v3272_v7, %v1737_v60  ;;  %v1205_v61 = vpop.f32.mrf.mxu1 }
 0x37b   :  { %v1206_v38 = vadd.f32 %v3527_v2, %v1205_v61  ;;  %v2363_v8 = vpop.eup %2362 }
 0x37c   :  { %1965 = vst.msk [vmem:[%s4116_s7 + $0x1d0] sm:$0xff] %vm1906_vm1, %v1738_v27 }
 0x37d   :  { %2364 = vtanh.f32 %v1206_v38 }
 0x37e   :  { %v671_v63 = vpop.f32.mrf.mxu0 }
 0x37f   :  { %v672_v0 = vadd.f32 %v3423_v54, %v671_v63 }
 0x381   :  { %v843_v4 = vmax.f32 %v672_v0, 0.0  ;;  %v1739_v6 = vpop.f32.mrf.mxu2  ;;  %v3609_v43 = vpop.f32.mrf.mxu3 }
 0x382   :  { %v1740_v10 = vadd.f32 %v3272_v7, %v1739_v6  ;;  %v1208_v12 = vpop.f32.mrf.mxu1 }
 0x383   :  { %v2365_v13 = vpop.eup %2364  ;;  %v920_v14 = vpack.c.bf16 %v843_v4, %v842_v1  ;;  %v1209_v17 = vadd.f32 %v3527_v2, %v1208_v12 }
 0x384   :  { %1966 = vst.msk [vmem:[%s4116_s7 + $0x1d8] sm:$0xff] %vm1906_vm1, %v1740_v10  ;;  %v1490_v15 = vpack.c.bf16 %v2365_v13, %v2363_v8  ;;  %v690_v13 = vadd.f32 %v3423_v54, %v3445_v44 }
 0x385   :  { %1247 = vmatmul.bf16.vlgmr.msrb.gmra.mxu3 %v920_v14  ;;  %2366 = vtanh.f32 %v1209_v17  ;;  %v692_v14 = vadd.f32 %v3423_v54, %v3453_v58 }
 0x386   :  { %1781 = vmatmul.bf16.gmra.mxu2 %v1490_v15 }
 0x387   :  { %v851_v17 = vmax.f32 %v692_v14, 0.0 }
 0x389   :  { %v1742_v20 = vpop.f32.mrf.mxu2  ;;  %v3618_v53 = vpop.f32.mrf.mxu3 }
 0x38a   :  { %v1743_v9 = vadd.f32 %v3272_v7, %v1742_v20  ;;  %v1210_v21 = vpop.f32.mrf.mxu1 }
 0x38b   :  { %v1211_v22 = vadd.f32 %v3527_v2, %v1210_v21  ;;  %v2367_v25 = vpop.eup %2366 }
 0x38c   :  { %1967 = vst.msk [vmem:[%s4116_s7 + $0x1e0] sm:$0xff] %vm1906_vm1, %v1743_v9 }
 0x38d   :  { %2368 = vtanh.f32 %v1211_v22 }
 0x391   :  { %v1744_v24 = vpop.f32.mrf.mxu2  ;;  %v3626_v61 = vpop.f32.mrf.mxu3 }
 0x392   :  { %v1745_v26 = vadd.f32 %v3272_v7, %v1744_v24  ;;  %v1213_v28 = vpop.f32.mrf.mxu1 }
 0x393   :  { %v2369_v31 = vpop.eup %2368  ;;  %v1214_v33 = vadd.f32 %v3527_v2, %v1213_v28 }
 0x394   :  { %1968 = vst.msk [vmem:[%s4116_s7 + $0x1e8] sm:$0xff] %vm1906_vm1, %v1745_v26  ;;  %v1491_v32 = vpack.c.bf16 %v2369_v31, %v2367_v25 }
 0x395   :  { %1252 = vmatmul.bf16.gmra.mxu3 %v3387_v46  ;;  %2370 = vtanh.f32 %v1214_v33 }
 0x396   :  { %1786 = vmatmul.bf16.gmra.mxu2 %v1491_v32 }
 0x399   :  { %v1747_v35 = vpop.f32.mrf.mxu2  ;;  %v3635_v6 = vpop.f32.mrf.mxu3 }
 0x39a   :  { %v1748_v36 = vadd.f32 %v3272_v7, %v1747_v35  ;;  %v1215_v37 = vpop.f32.mrf.mxu1  ;;  %v695_v35 = vadd.f32 %v3423_v54, %v3470_v3 }
 0x39b   :  { %v1216_v41 = vadd.f32 %v3527_v2, %v1215_v37  ;;  %v2371_v47 = vpop.eup %2370 }
 0x39c   :  { %1969 = vst.msk [vmem:[%s4116_s7 + $0x1f0] sm:$0xff] %vm1906_vm1, %v1748_v36  ;;  %v697_v36 = vadd.f32 %v3423_v54, %v3478_v18 }
 0x39d   :  { %2372 = vtanh.f32 %v1216_v41  ;;  %v852_v41 = vmax.f32 %v695_v35, 0.0 }
 0x3a1   :  { %v1749_v46 = vpop.f32.mrf.mxu2  ;;  %v3647_v20 = vpop.f32.mrf.mxu3 }
 0x3a2   :  { %v1750_v48 = vadd.f32 %v3272_v7, %v1749_v46  ;;  %v1218_v49 = vpop.f32.mrf.mxu1  ;;  %v853_v46 = vmax.f32 %v697_v36, 0.0 }
 0x3a3   :  { %v2373_v50 = vpop.eup %2372  ;;  %v1219_v52 = vadd.f32 %v3527_v2, %v1218_v49 }
 0x3a4   :  { %1970 = vst.msk [vmem:[%s4116_s7 + $0x1f8] sm:$0xff] %vm1906_vm1, %v1750_v48  ;;  %v1492_v51 = vpack.c.bf16 %v2373_v50, %v2371_v47  ;;  %v925_v18 = vpack.c.bf16 %v853_v46, %v852_v41  ;;  %v710_v41 = vadd.f32 %v3423_v54, %v3540_v16  ;;  %v712_v46 = vadd.f32 %v3423_v54, %v3548_v30 }
 0x3a5   :  { %1257 = vmatmul.bf16.gmra.mxu3 %v3412_v11  ;;  %2374 = vtanh.f32 %v1219_v52 }
 0x3a6   :  { %1791 = vmatmul.bf16.gmra.mxu2 %v1492_v51 }
 0x3a9   :  { %v1752_v55 = vpop.f32.mrf.mxu2  ;;  %v3655_v28 = vpop.f32.mrf.mxu3 }
 0x3aa   :  { %v1753_v56 = vadd.f32 %v3272_v7, %v1752_v55  ;;  %v1220_v60 = vpop.f32.mrf.mxu1 }
 0x3ab   :  { %v1221_v27 = vadd.f32 %v3527_v2, %v1220_v60  ;;  %v2375_v38 = vpop.eup %2374 }
 0x3ac   :  { %1971 = vst.msk [vmem:[%s4116_s7 + $0x200] sm:$0xff] %vm1906_vm1, %v1753_v56 }
 0x3ad   :  { %2376 = vtanh.f32 %v1221_v27 }
 0x3b1   :  { %v1754_v11 = vpop.f32.mrf.mxu2  ;;  %v3667_v47 = vpop.f32.mrf.mxu3 }
 0x3b2   :  { %v1755_v62 = vadd.f32 %v3272_v7, %v1754_v11  ;;  %v1223_v63 = vpop.f32.mrf.mxu1 }
 0x3b3   :  { %v2377_v0 = vpop.eup %2376  ;;  %v1224_v4 = vadd.f32 %v3527_v2, %v1223_v63 }
 0x3b4   :  { %1972 = vst.msk [vmem:[%s4116_s7 + $0x208] sm:$0xff] %vm1906_vm1, %v1755_v62  ;;  %v1493_v1 = vpack.c.bf16 %v2377_v0, %v2375_v38  ;;  %v700_v38 = vadd.f32 %v3423_v54, %v3495_v29  ;;  %v702_v62 = vadd.f32 %v3423_v54, %v3503_v45 }
 0x3b5   :  { %1262 = vmatmul.bf16.gmra.mxu3 %v3442_v40  ;;  %2378 = vtanh.f32 %v1224_v4  ;;  %v850_v40 = vmax.f32 %v690_v13, 0.0 }
 0x3b6   :  { %1796 = vmatmul.bf16.gmra.mxu2 %v1493_v1  ;;  %v854_v0 = vmax.f32 %v700_v38, 0.0  ;;  %v855_v1 = vmax.f32 %v702_v62, 0.0 }
 0x3b7   :  { %v924_v58 = vpack.c.bf16 %v851_v17, %v850_v40 }
 0x3b8   :  { %v926_v13 = vpack.c.bf16 %v855_v1, %v854_v0 }
 0x3b9   :  { %v1757_v8 = vpop.f32.mrf.mxu2  ;;  %v746_v56 = vpop.f32.mrf.mxu3 }
 0x3ba   :  { %v1758_v10 = vadd.f32 %v3272_v7, %v1757_v8  ;;  %v1225_v12 = vpop.f32.mrf.mxu1 }
 0x3bb   :  { %v1226_v15 = vadd.f32 %v3527_v2, %v1225_v12  ;;  %v2379_v21 = vpop.eup %2378 }
 0x3bc   :  { %1973 = vst.msk [vmem:[%s4116_s7 + $0x210] sm:$0xff] %vm1906_vm1, %v1758_v10 }
 0x3bd   :  { %2380 = vtanh.f32 %v1226_v15 }
 0x3c1   :  { %v1759_v9 = vpop.f32.mrf.mxu2 }
 0x3c2   :  { %v1760_v44 = vadd.f32 %v3272_v7, %v1759_v9  ;;  %v1228_v22 = vpop.f32.mrf.mxu1  ;;  %v705_v9 = vadd.f32 %v3423_v54, %v3517_v57  ;;  %v3704_v57 = vld [vmem:[%s4115_s6] ss:$0 sm:$0xff] }
 0x3c3   :  { %v2381_v24 = vpop.eup %2380  ;;  %v1229_v26 = vadd.f32 %v3527_v2, %v1228_v22 }
 0x3c4   :  { %1974 = vst.msk [vmem:[%s4116_s7 + $0x218] sm:$0xff] %vm1906_vm1, %v1760_v44  ;;  %v1494_v25 = vpack.c.bf16 %v2381_v24, %v2379_v21  ;;  %v707_v21 = vadd.f32 %v3423_v54, %v3530_v5  ;;  %v856_v22 = vmax.f32 %v705_v9, 0.0 }
 0x3c5   :  { %1267 = vmatmul.bf16.gmra.mxu3 %v924_v58  ;;  %2382 = vtanh.f32 %v1229_v26 }
 0x3c6   :  { %1801 = vmatmul.bf16.gmra.mxu2 %v1494_v25  ;;  %v857_v24 = vmax.f32 %v707_v21, 0.0 }
 0x3c9   :  { %v1762_v31 = vpop.f32.mrf.mxu2 }
 0x3ca   :  { %v1763_v32 = vadd.f32 %v3272_v7, %v1762_v31  ;;  %v1230_v33 = vpop.f32.mrf.mxu1  ;;  %v927_v31 = vpack.c.bf16 %v857_v24, %v856_v22 }
 0x3cb   :  { %v1231_v37 = vadd.f32 %v3527_v2, %v1230_v33  ;;  %v2383_v49 = vpop.eup %2382 }
 0x3cc   :  { %1975 = vst.msk [vmem:[%s4116_s7 + $0x220] sm:$0xff] %vm1906_vm1, %v1763_v32 }
 0x3cd   :  { %2384 = vtanh.f32 %v1231_v37 }
 0x3d1   :  { %v1764_v48 = vpop.f32.mrf.mxu2 }
 0x3d2   :  { %v1765_v3 = vadd.f32 %v3272_v7, %v1764_v48  ;;  %v1233_v50 = vpop.f32.mrf.mxu1 }
 0x3d3   :  { %v2385_v51 = vpop.eup %2384  ;;  %v1234_v55 = vadd.f32 %v3527_v2, %v1233_v50 }
 0x3d4   :  { %1976 = vst.msk [vmem:[%s4116_s7 + $0x228] sm:$0xff] %vm1906_vm1, %v1765_v3  ;;  %v1495_v52 = vpack.c.bf16 %v2385_v51, %v2383_v49  ;;  %v858_v49 = vmax.f32 %v710_v41, 0.0  ;;  %v859_v3 = vmax.f32 %v712_v46, 0.0 }
 0x3d5   :  { %1272 = vmatmul.bf16.gmra.mxu3 %v925_v18  ;;  %2386 = vtanh.f32 %v1234_v55 }
 0x3d6   :  { %1806 = vmatmul.bf16.gmra.mxu2 %v1495_v52  ;;  %v928_v16 = vpack.c.bf16 %v859_v3, %v858_v49 }
 0x3d9   :  { %v1767_v60 = vpop.f32.mrf.mxu2 }
 0x3da   :  { %v1768_v27 = vadd.f32 %v3272_v7, %v1767_v60  ;;  %v1235_v11 = vpop.f32.mrf.mxu1 }
 0x3db   :  { %v1236_v63 = vadd.f32 %v3527_v2, %v1235_v11  ;;  %v2387_v8 = vpop.eup %2386  ;;  %v717_v11 = vadd.f32 %v3423_v54, %v3566_v59 }
 0x3dc   :  { %1977 = vst.msk [vmem:[%s4116_s7 + $0x230] sm:$0xff] %vm1906_vm1, %v1768_v27  ;;  %v715_v27 = vadd.f32 %v3423_v54, %v3558_v39 }
 0x3dd   :  { %2388 = vtanh.f32 %v1236_v63  ;;  %v861_v63 = vmax.f32 %v717_v11, 0.0 }
 0x3de   :  { %v860_v62 = vmax.f32 %v715_v27, 0.0 }
 0x3e0   :  { %v929_v39 = vpack.c.bf16 %v861_v63, %v860_v62 }
 0x3e1   :  { %v1769_v4 = vpop.f32.mrf.mxu2 }
 0x3e2   :  { %v1770_v10 = vadd.f32 %v3272_v7, %v1769_v4  ;;  %v1238_v12 = vpop.f32.mrf.mxu1 }
 0x3e3   :  { %v2389_v29 = vpop.eup %2388  ;;  %v1239_v14 = vadd.f32 %v3527_v2, %v1238_v12 }
 0x3e4   :  { %1978 = vst.msk [vmem:[%s4116_s7 + $0x238] sm:$0xff] %vm1906_vm1, %v1770_v10  ;;  %v1496_v45 = vpack.c.bf16 %v2389_v29, %v2387_v8 }
 0x3e5   :  { %1277 = vmatmul.bf16.gmra.mxu3 %v926_v13  ;;  %2390 = vtanh.f32 %v1239_v14  ;;  %v720_v14 = vadd.f32 %v3423_v54, %v3576_v42 }
 0x3e6   :  { %1811 = vmatmul.bf16.gmra.mxu2 %v1496_v45 }
 0x3e9   :  { %v1772_v15 = vpop.f32.mrf.mxu2 }
 0x3ea   :  { %v1773_v40 = vadd.f32 %v3272_v7, %v1772_v15  ;;  %v1240_v17 = vpop.f32.mrf.mxu1  ;;  %v722_v15 = vadd.f32 %v3423_v54, %v3584_v19 }
 0x3eb   :  { %v1241_v44 = vadd.f32 %v3527_v2, %v1240_v17  ;;  %v2391_v7 = vpop.eup %2390  ;;  %v862_v17 = vmax.f32 %v720_v14, 0.0 }
 0x3ec   :  { %1979 = vst.msk [vmem:[%s4116_s7 + $0x240] sm:$0xff] %vm1906_vm1, %v1773_v40  ;;  %v863_v9 = vmax.f32 %v722_v15, 0.0 }
 0x3ed   :  { %2392 = vtanh.f32 %v1241_v44 }
 0x3ee   :  { %v930_v42 = vpack.c.bf16 %v863_v9, %v862_v17 }
 0x3f1   :  { %v1774_v58 = vpop.f32.mrf.mxu2 }
 0x3f2   :  { %v1775_v5 = vadd.f32 %v3704_v57, %v1774_v58  ;;  %v1243_v25 = vpop.f32.mrf.mxu1 }
 0x3f3   :  { %v2393_v26 = vpop.eup %2392  ;;  %v1244_v33 = vadd.f32 %v3527_v2, %v1243_v25 }
 0x3f4   :  { %1980 = vst.msk [vmem:[%s4116_s7 + $0x248] sm:$0xff] %vm1906_vm1, %v1775_v5  ;;  %v1497_v32 = vpack.c.bf16 %v2393_v26, %v2391_v7 }
 0x3f5   :  { %1282 = vmatmul.bf16.gmra.mxu3 %v927_v31  ;;  %2394 = vtanh.f32 %v1244_v33  ;;  %v725_v31 = vadd.f32 %v3423_v54, %v3592_v23 }
 0x3f6   :  { %1816 = vmatmul.bf16.gmra.mxu2 %v1497_v32  ;;  %v727_v32 = vadd.f32 %v3423_v54, %v3601_v34 }
 0x3f9   :  { %v1777_v35 = vpop.f32.mrf.mxu2 }
 0x3fa   :  { %v1778_v36 = vadd.f32 %v3704_v57, %v1777_v35  ;;  %v1245_v37 = vpop.f32.mrf.mxu1  ;;  %v864_v35 = vmax.f32 %v725_v31, 0.0 }
 0x3fb   :  { %v1246_v48 = vadd.f32 %v3527_v2, %v1245_v37  ;;  %v2395_v51 = vpop.eup %2394 }
 0x3fc   :  { %1981 = vst.msk [vmem:[%s4116_s7 + $0x250] sm:$0xff] %vm1906_vm1, %v1778_v36  ;;  %v865_v36 = vmax.f32 %v727_v32, 0.0 }
 0x3fd   :  { %2396 = vtanh.f32 %v1246_v48 }
 0x3fe   :  { %v931_v23 = vpack.c.bf16 %v865_v36, %v864_v35 }
 0x401   :  { %v1779_v50 = vpop.f32.mrf.mxu2 }
 0x402   :  { %v1780_v18 = vadd.f32 %v3704_v57, %v1779_v50 }
 0x403   :  { %v2397_v52 = vpop.eup %2396 }
 0x404   :  { %1982 = vst.msk [vmem:[%s4116_s7 + $0x258] sm:$0xff] %vm1906_vm1, %v1780_v18  ;;  %v1498_v30 = vpack.c.bf16 %v2397_v52, %v2395_v51  ;;  %v730_v52 = vadd.f32 %v3423_v54, %v3609_v43 }
 0x405   :  { %1287 = vmatmul.bf16.gmra.mxu3 %v928_v16  ;;  %v732_v16 = vadd.f32 %v3423_v54, %v3618_v53 }
 0x406   :  { %1821 = vmatmul.bf16.gmra.mxu2 %v1498_v30 }
 0x408   :  { %v1248_v55 = vpop.f32.mrf.mxu3 }
 0x409   :  { %v1782_v56 = vpop.f32.mrf.mxu2  ;;  %v1249_v38 = vadd.f32 %v3527_v2, %v1248_v55  ;;  %v866_v55 = vmax.f32 %v730_v52, 0.0 }
 0x40a   :  { %v1783_v60 = vadd.f32 %v3704_v57, %v1782_v56  ;;  %v867_v56 = vmax.f32 %v732_v16, 0.0 }
 0x40b   :  { %2398 = vtanh.f32 %v1249_v38 }
 0x40c   :  { %1983 = vst.msk [vmem:[%s4116_s7 + $0x260] sm:$0xff] %vm1906_vm1, %v1783_v60  ;;  %v932_v43 = vpack.c.bf16 %v867_v56, %v866_v55 }
 0x410   :  { %v1250_v0 = vpop.f32.mrf.mxu3 }
 0x411   :  { %v1251_v1 = vadd.f32 %v3527_v2, %v1250_v0  ;;  %v1784_v4 = vpop.f32.mrf.mxu2  ;;  %v3743_v59 = vpop.eup %2398 }
 0x412   :  { %v1785_v8 = vadd.f32 %v3704_v57, %v1784_v4 }
 0x413   :  { %2400 = vtanh.f32 %v1251_v1 }
 0x414   :  { %1984 = vst.msk [vmem:[%s4116_s7 + $0x268] sm:$0xff] %vm1906_vm1, %v1785_v8  ;;  %v735_v8 = vadd.f32 %v3423_v54, %v3626_v61 }
 0x415   :  { %1292 = vmatmul.bf16.gmra.mxu3 %v929_v39  ;;  %v737_v39 = vadd.f32 %v3423_v54, %v3635_v6 }
 0x418   :  { %v1253_v10 = vpop.f32.mrf.mxu3 }
 0x419   :  { %v3745_v12 = vpop.eup %2400  ;;  %v1787_v29 = vpop.f32.mrf.mxu2  ;;  %v1254_v40 = vadd.f32 %v3527_v2, %v1253_v10 }
 0x41a   :  { %v1499_v13 = vpack.c.bf16 %v3745_v12, %v3743_v59  ;;  %v1788_v45 = vadd.f32 %v3704_v57, %v1787_v29  ;;  %v868_v29 = vmax.f32 %v735_v8, 0.0 }
 0x41b   :  { %2402 = vtanh.f32 %v1254_v40 }
 0x41c   :  { %1985 = vst.msk [vmem:[%s4116_s7 + $0x270] sm:$0xff] %vm1906_vm1, %v1788_v45  ;;  %v869_v45 = vmax.f32 %v737_v39, 0.0 }
 0x41e   :  { %v933_v61 = vpack.c.bf16 %v869_v45, %v868_v29 }
 0x420   :  { %v1255_v21 = vpop.f32.mrf.mxu3 }
 0x421   :  { %v1256_v44 = vadd.f32 %v3527_v2, %v1255_v21  ;;  %v1789_v22 = vpop.f32.mrf.mxu2  ;;  %v3765_v19 = vpop.eup %2402 }
 0x422   :  { %v1790_v24 = vadd.f32 %v3704_v57, %v1789_v22 }
 0x423   :  { %2404 = vtanh.f32 %v1256_v44 }
 0x424   :  { %1986 = vst.msk [vmem:[%s4116_s7 + $0x278] sm:$0xff] %vm1906_vm1, %v1790_v24 }
 0x425   :  { %1297 = vmatmul.bf16.gmra.mxu3 %v930_v42  ;;  %v740_v42 = vadd.f32 %v3423_v54, %v3647_v20 }
 0x428   :  { %v1258_v58 = vpop.f32.mrf.mxu3 }
 0x429   :  { %v3767_v7 = vpop.eup %2404  ;;  %v1792_v5 = vpop.f32.mrf.mxu2  ;;  %v1259_v33 = vadd.f32 %v3527_v2, %v1258_v58  ;;  %v742_v58 = vadd.f32 %v3423_v54, %v3655_v28 }
 0x42a   :  { %v1793_v25 = vadd.f32 %v3704_v57, %v1792_v5  ;;  %v1500_v26 = vpack.c.bf16 %v3767_v7, %v3765_v19 }
 0x42b   :  { %2406 = vtanh.f32 %v1259_v33  ;;  %v871_v31 = vmax.f32 %v742_v58, 0.0 }
 0x42c   :  { %1987 = vst.msk [vmem:[%s4116_s7 + $0x280] sm:$0xff] %vm1906_vm1, %v1793_v25  ;;  %v870_v25 = vmax.f32 %v740_v42, 0.0 }
 0x42e   :  { %v934_v20 = vpack.c.bf16 %v871_v31, %v870_v25 }
 0x430   :  { %v1260_v37 = vpop.f32.mrf.mxu3 }
 0x431   :  { %v1261_v41 = vadd.f32 %v3527_v2, %v1260_v37  ;;  %v1794_v46 = vpop.f32.mrf.mxu2  ;;  %v3787_v34 = vpop.eup %2406 }
 0x432   :  { %v1795_v48 = vadd.f32 %v3704_v57, %v1794_v46 }
 0x433   :  { %2408 = vtanh.f32 %v1261_v41 }
 0x434   :  { %1988 = vst.msk [vmem:[%s4116_s7 + $0x288] sm:$0xff] %vm1906_vm1, %v1795_v48 }
 0x435   :  { %1302 = vmatmul.bf16.gmra.mxu3 %v931_v23 }
 0x438   :  { %v1263_v49 = vpop.f32.mrf.mxu3 }
 0x439   :  { %v3789_v3 = vpop.eup %2408  ;;  %v1797_v50 = vpop.f32.mrf.mxu2  ;;  %v1264_v30 = vadd.f32 %v3527_v2, %v1263_v49  ;;  %v745_v49 = vadd.f32 %v3423_v54, %v3667_v47 }
 0x43a   :  { %v1798_v51 = vadd.f32 %v3704_v57, %v1797_v50  ;;  %v1501_v18 = vpack.c.bf16 %v3789_v3, %v3787_v34 }
 0x43b   :  { %2410 = vtanh.f32 %v1264_v30 }
 0x43c   :  { %1989 = vst.msk [vmem:[%s4116_s7 + $0x290] sm:$0xff] %vm1906_vm1, %v1798_v51  ;;  %v872_v51 = vmax.f32 %v745_v49, 0.0 }
 0x43e   :  { %v935_v56 = vpack.c.bf16 %v872_v51, %v872_v51 }
 0x440   :  { %v1265_v60 = vpop.f32.mrf.mxu3 }
 0x441   :  { %v1266_v27 = vadd.f32 %v3527_v2, %v1265_v60  ;;  %v1799_v11 = vpop.f32.mrf.mxu2  ;;  %v3809_v53 = vpop.eup %2410 }
 0x442   :  { %v1800_v38 = vadd.f32 %v3704_v57, %v1799_v11 }
 0x443   :  { %2412 = vtanh.f32 %v1266_v27 }
 0x444   :  { %1990 = vst.msk [vmem:[%s4116_s7 + $0x298] sm:$0xff] %vm1906_vm1, %v1800_v38 }
 0x445   :  { %1307 = vmatmul.bf16.gmra.mxu3 %v932_v43 }
 0x448   :  { %v1268_v62 = vpop.f32.mrf.mxu3 }
 0x449   :  { %v3811_v63 = vpop.eup %2412  ;;  %v1802_v0 = vpop.f32.mrf.mxu2  ;;  %v1269_v10 = vadd.f32 %v3527_v2, %v1268_v62 }
 0x44a   :  { %v1803_v1 = vadd.f32 %v3704_v57, %v1802_v0  ;;  %v1502_v4 = vpack.c.bf16 %v3811_v63, %v3809_v53 }
 0x44b   :  { %2414 = vtanh.f32 %v1269_v10 }
 0x44c   :  { %1991 = vst.msk [vmem:[%s4116_s7 + $0x2a0] sm:$0xff] %vm1906_vm1, %v1803_v1 }
 0x450   :  { %v1270_v14 = vpop.f32.mrf.mxu3 }
 0x451   :  { %v1271_v15 = vadd.f32 %v3527_v2, %v1270_v14  ;;  %v1804_v40 = vpop.f32.mrf.mxu2  ;;  %v3831_v6 = vpop.eup %2414 }
 0x452   :  { %v1805_v17 = vadd.f32 %v3704_v57, %v1804_v40 }
 0x453   :  { %2416 = vtanh.f32 %v1271_v15 }
 0x454   :  { %1992 = vst.msk [vmem:[%s4116_s7 + $0x2a8] sm:$0xff] %vm1906_vm1, %v1805_v17 }
 0x455   :  { %1312 = vmatmul.bf16.gmra.mxu3 %v933_v61 }
 0x458   :  { %v1273_v9 = vpop.f32.mrf.mxu3 }
 0x459   :  { %v3833_v21 = vpop.eup %2416  ;;  %v1807_v44 = vpop.f32.mrf.mxu2  ;;  %v1274_v5 = vadd.f32 %v3527_v2, %v1273_v9 }
 0x45a   :  { %v1808_v22 = vadd.f32 %v3704_v57, %v1807_v44  ;;  %v1503_v24 = vpack.c.bf16 %v3833_v21, %v3831_v6 }
 0x45b   :  { %2418 = vtanh.f32 %v1274_v5 }
 0x45c   :  { %1993 = vst.msk [vmem:[%s4116_s7 + $0x2b0] sm:$0xff] %vm1906_vm1, %v1808_v22 }
 0x460   :  { %v1275_v32 = vpop.f32.mrf.mxu3 }
 0x461   :  { %v1276_v33 = vadd.f32 %v3527_v2, %v1275_v32  ;;  %v1809_v35 = vpop.f32.mrf.mxu2  ;;  %v3853_v28 = vpop.eup %2418 }
 0x462   :  { %v1810_v36 = vadd.f32 %v3704_v57, %v1809_v35 }
 0x463   :  { %2420 = vtanh.f32 %v1276_v33 }
 0x464   :  { %1994 = vst.msk [vmem:[%s4116_s7 + $0x2b8] sm:$0xff] %vm1906_vm1, %v1810_v36 }
 0x465   :  { %1317 = vmatmul.bf16.gmra.mxu3 %v934_v20 }
 0x468   :  { %v1278_v37 = vpop.f32.mrf.mxu3 }
 0x469   :  { %v3855_v41 = vpop.eup %2420  ;;  %v1812_v46 = vpop.f32.mrf.mxu2  ;;  %v1279_v50 = vadd.f32 %v3527_v2, %v1278_v37 }
 0x46a   :  { %v1813_v48 = vadd.f32 %v3704_v57, %v1812_v46  ;;  %v1504_v23 = vpack.c.bf16 %v3855_v41, %v3853_v28 }
 0x46b   :  { %2422 = vtanh.f32 %v1279_v50 }
 0x46c   :  { %1995 = vst.msk [vmem:[%s4116_s7 + $0x2c0] sm:$0xff] %vm1906_vm1, %v1813_v48 }
 0x470   :  { %v1280_v52 = vpop.f32.mrf.mxu3 }
 0x471   :  { %v1281_v16 = vadd.f32 %v3527_v2, %v1280_v52  ;;  %v1814_v30 = vpop.f32.mrf.mxu2  ;;  %v3873_v54 = vpop.eup %2422 }
 0x472   :  { %v1815_v55 = vadd.f32 %v3704_v57, %v1814_v30 }
 0x473   :  { %2424 = vtanh.f32 %v1281_v16 }
 0x474   :  { %1996 = vst.msk [vmem:[%s4116_s7 + $0x2c8] sm:$0xff] %vm1906_vm1, %v1815_v55 }
 0x475   :  { %1322 = vmatmul.bf16.gmra.mxu3 %v935_v56 }
 0x478   :  { %v1283_v47 = vpop.f32.mrf.mxu3 }
 0x479   :  { %v3875_v60 = vpop.eup %2424  ;;  %v1817_v27 = vpop.f32.mrf.mxu2  ;;  %v1284_v43 = vadd.f32 %v3527_v2, %v1283_v47 }
 0x47a   :  { %v1818_v11 = vadd.f32 %v3704_v57, %v1817_v27  ;;  %v1505_v38 = vpack.c.bf16 %v3875_v60, %v3873_v54 }
 0x47b   :  { %2426 = vtanh.f32 %v1284_v43 }
 0x47c   :  { %1997 = vst.msk [vmem:[%s4116_s7 + $0x2d0] sm:$0xff] %vm1906_vm1, %v1818_v11 }
 0x480   :  { %v1285_v62 = vpop.f32.mrf.mxu3 }
 0x481   :  { %v1286_v0 = vadd.f32 %v3527_v2, %v1285_v62  ;;  %v1819_v1 = vpop.f32.mrf.mxu2  ;;  %v3894_v39 = vpop.eup %2426 }
 0x482   :  { %v1820_v8 = vadd.f32 %v3704_v57, %v1819_v1 }
 0x483   :  { %2428 = vtanh.f32 %v1286_v0 }
 0x484   :  { %1998 = vst.msk [vmem:[%s4116_s7 + $0x2d8] sm:$0xff] %vm1906_vm1, %v1820_v8 }
 0x485   :  { %1826 = vmatmul.bf16.vlgmr.msra.gmra.mxu3 %v1499_v13 }
 0x488   :  { %v1288_v10 = vpop.f32.mrf.mxu3 }
 0x489   :  { %v3896_v29 = vpop.eup %2428  ;;  %v1822_v45 = vpop.f32.mrf.mxu2  ;;  %v1289_v40 = vadd.f32 %v3527_v2, %v1288_v10 }
 0x48a   :  { %v1823_v14 = vadd.f32 %v3704_v57, %v1822_v45  ;;  %v1506_v15 = vpack.c.bf16 %v3896_v29, %v3894_v39 }
 0x48b   :  { %2430 = vtanh.f32 %v1289_v40 }
 0x48c   :  { %1999 = vst.msk [vmem:[%s4116_s7 + $0x2e0] sm:$0xff] %vm1906_vm1, %v1823_v14 }
 0x490   :  { %v1290_v59 = vpop.f32.mrf.mxu3 }
 0x491   :  { %v1291_v12 = vadd.f32 %v3527_v2, %v1290_v59  ;;  %v1824_v13 = vpop.f32.mrf.mxu2  ;;  %v3915_v61 = vpop.eup %2430 }
 0x492   :  { %v1825_v17 = vadd.f32 %v3704_v57, %v1824_v13 }
 0x493   :  { %2432 = vtanh.f32 %v1291_v12 }
 0x494   :  { %2000 = vst.msk [vmem:[%s4116_s7 + $0x2e8] sm:$0xff] %vm1906_vm1, %v1825_v17 }
 0x495   :  { %1831 = vmatmul.bf16.gmra.mxu3 %v1500_v26 }
 0x498   :  { %v1293_v9 = vpop.f32.mrf.mxu3 }
 0x499   :  { %v3917_v44 = vpop.eup %2432  ;;  %v1294_v42 = vadd.f32 %v3527_v2, %v1293_v9 }
 0x49a   :  { %v1507_v22 = vpack.c.bf16 %v3917_v44, %v3915_v61 }
 0x49b   :  { %2434 = vtanh.f32 %v1294_v42 }
 0x4a0   :  { %v1295_v58 = vpop.f32.mrf.mxu3 }
 0x4a1   :  { %v1296_v5 = vadd.f32 %v3527_v2, %v1295_v58  ;;  %v2435_v19 = vpop.eup %2434 }
 0x4a3   :  { %2436 = vtanh.f32 %v1296_v5 }
 0x4a5   :  { %1836 = vmatmul.bf16.gmra.mxu3 %v1501_v18 }
 0x4a8   :  { %v1298_v7 = vpop.f32.mrf.mxu3 }
 0x4a9   :  { %v2437_v26 = vpop.eup %2436  ;;  %v1299_v31 = vadd.f32 %v3527_v2, %v1298_v7  ;;  %v2474_v7 = vld [vmem:[%s4113_s4] ss:$0 sm:$0xff] }
 0x4aa   :  { %v1508_v25 = vpack.c.bf16 %v2437_v26, %v2435_v19 }
 0x4ab   :  { %2438 = vtanh.f32 %v1299_v31 }
 0x4b0   :  { %v1300_v32 = vpop.f32.mrf.mxu3 }
 0x4b1   :  { %v1301_v33 = vadd.f32 %v3527_v2, %v1300_v32  ;;  %v2439_v35 = vpop.eup %2438 }
 0x4b3   :  { %2440 = vtanh.f32 %v1301_v33 }
 0x4b5   :  { %1841 = vmatmul.bf16.gmra.mxu3 %v1502_v4 }
 0x4b8   :  { %v1303_v36 = vpop.f32.mrf.mxu3 }
 0x4b9   :  { %v2441_v20 = vpop.eup %2440  ;;  %v1304_v3 = vadd.f32 %v3527_v2, %v1303_v36 }
 0x4ba   :  { %v1509_v34 = vpack.c.bf16 %v2441_v20, %v2439_v35 }
 0x4bb   :  { %2442 = vtanh.f32 %v1304_v3 }
 0x4c0   :  { %v1305_v18 = vpop.f32.mrf.mxu3 }
 0x4c1   :  { %v1306_v37 = vadd.f32 %v3527_v2, %v1305_v18  ;;  %v2443_v46 = vpop.eup %2442 }
 0x4c3   :  { %2444 = vtanh.f32 %v1306_v37 }
 0x4c5   :  { %1846 = vmatmul.bf16.gmra.mxu3 %v1503_v24 }
 0x4c8   :  { %v1308_v48 = vpop.f32.mrf.mxu3 }
 0x4c9   :  { %v2445_v49 = vpop.eup %2444  ;;  %v1309_v63 = vadd.f32 %v3527_v2, %v1308_v48 }
 0x4ca   :  { %v1510_v53 = vpack.c.bf16 %v2445_v49, %v2443_v46 }
 0x4cb   :  { %2446 = vtanh.f32 %v1309_v63 }
 0x4d0   :  { %v1310_v4 = vpop.f32.mrf.mxu3 }
 0x4d1   :  { %v1311_v50 = vadd.f32 %v3527_v2, %v1310_v4  ;;  %v2447_v51 = vpop.eup %2446 }
 0x4d3   :  { %2448 = vtanh.f32 %v1311_v50 }
 0x4d5   :  { %1851 = vmatmul.bf16.gmra.mxu3 %v1504_v23 }
 0x4d8   :  { %v1313_v52 = vpop.f32.mrf.mxu3 }
 0x4d9   :  { %v2449_v16 = vpop.eup %2448  ;;  %v1314_v21 = vadd.f32 %v3527_v2, %v1313_v52 }
 0x4da   :  { %v1511_v6 = vpack.c.bf16 %v2449_v16, %v2447_v51 }
 0x4db   :  { %2450 = vtanh.f32 %v1314_v21 }
 0x4e0   :  { %v1315_v24 = vpop.f32.mrf.mxu3 }
 0x4e1   :  { %v1316_v30 = vadd.f32 %v3527_v2, %v1315_v24  ;;  %v2451_v55 = vpop.eup %2450 }
 0x4e3   :  { %2452 = vtanh.f32 %v1316_v30 }
 0x4e5   :  { %1856 = vmatmul.bf16.gmra.mxu3 %v1505_v38 }
 0x4e8   :  { %v1318_v56 = vpop.f32.mrf.mxu3 }
 0x4e9   :  { %v2453_v47 = vpop.eup %2452  ;;  %v1319_v41 = vadd.f32 %v3527_v2, %v1318_v56 }
 0x4ea   :  { %v1512_v28 = vpack.c.bf16 %v2453_v47, %v2451_v55 }
 0x4eb   :  { %2454 = vtanh.f32 %v1319_v41 }
 0x4f0   :  { %v1320_v23 = vpop.f32.mrf.mxu3 }
 0x4f1   :  { %v1321_v27 = vadd.f32 %v3527_v2, %v1320_v23  ;;  %v2455_v11 = vpop.eup %2454 }
 0x4f3   :  { %2456 = vtanh.f32 %v1321_v27 }
 0x4f5   :  { %1861 = vmatmul.bf16.gmra.mxu3 %v1506_v15 }
 0x4f8   :  { %v1323_v43 = vpop.f32.mrf.mxu3 }
 0x4f9   :  { %v2457_v62 = vpop.eup %2456  ;;  %v1324_v26 = vadd.f32 %v2474_v7, %v1323_v43 }
 0x4fa   :  { %v1513_v54 = vpack.c.bf16 %v2457_v62, %v2455_v11 }
 0x4fb   :  { %2458 = vtanh.f32 %v1324_v26 }
 0x500   :  { %v1325_v60 = vpop.f32.mrf.mxu3 }
 0x501   :  { %v2459_v32 = vpop.eup %2458 }
 0x502   :  { %v1514_v36 = vpack.c.bf16 %v2459_v32, %v2459_v32 }
 0x505   :  { %1866 = vmatmul.bf16.gmra.mxu3 %v1507_v22 }
 0x508   :  { %v1827_v38 = vpop.f32.mrf.mxu3 }
 0x509   :  { %v1828_v0 = vadd.f32 %v3704_v57, %v1827_v38 }
 0x50b   :  { %2001 = vst.msk [vmem:[%s4116_s7 + $0x2f0] sm:$0xff] %vm1906_vm1, %v1828_v0 }
 0x510   :  { %v1829_v2 = vpop.f32.mrf.mxu3 }
 0x511   :  { %v1830_v1 = vadd.f32 %v3704_v57, %v1829_v2 }
 0x513   :  { %2002 = vst.msk [vmem:[%s4116_s7 + $0x2f8] sm:$0xff] %vm1906_vm1, %v1830_v1 }
 0x515   :  { %1871 = vmatmul.bf16.gmra.mxu3 %v1508_v25 }
 0x518   :  { %v1832_v8 = vpop.f32.mrf.mxu3 }
 0x519   :  { %v1833_v39 = vadd.f32 %v3704_v57, %v1832_v8 }
 0x51b   :  { %2003 = vst.msk [vmem:[%s4116_s7 + $0x300] sm:$0xff] %vm1906_vm1, %v1833_v39 }
 0x520   :  { %v1834_v10 = vpop.f32.mrf.mxu3 }
 0x521   :  { %v1835_v29 = vadd.f32 %v3704_v57, %v1834_v10 }
 0x523   :  { %2004 = vst.msk [vmem:[%s4116_s7 + $0x308] sm:$0xff] %vm1906_vm1, %v1835_v29 }
 0x525   :  { %1876 = vmatmul.bf16.gmra.mxu3 %v1509_v34 }
 0x528   :  { %v1837_v45 = vpop.f32.mrf.mxu3 }
 0x529   :  { %v1838_v14 = vadd.f32 %v3704_v57, %v1837_v45 }
 0x52b   :  { %2005 = vst.msk [vmem:[%s4116_s7 + $0x310] sm:$0xff] %vm1906_vm1, %v1838_v14 }
 0x530   :  { %v1839_v15 = vpop.f32.mrf.mxu3 }
 0x531   :  { %v1840_v40 = vadd.f32 %v3704_v57, %v1839_v15 }
 0x533   :  { %2006 = vst.msk [vmem:[%s4116_s7 + $0x318] sm:$0xff] %vm1906_vm1, %v1840_v40 }
 0x535   :  { %1881 = vmatmul.bf16.gmra.mxu3 %v1510_v53 }
 0x538   :  { %v1842_v59 = vpop.f32.mrf.mxu3 }
 0x539   :  { %v1843_v12 = vadd.f32 %v3704_v57, %v1842_v59 }
 0x53b   :  { %2007 = vst.msk [vmem:[%s4116_s7 + $0x320] sm:$0xff] %vm1906_vm1, %v1843_v12 }
 0x540   :  { %v1844_v13 = vpop.f32.mrf.mxu3 }
 0x541   :  { %v1845_v17 = vadd.f32 %v3704_v57, %v1844_v13 }
 0x543   :  { %2008 = vst.msk [vmem:[%s4116_s7 + $0x328] sm:$0xff] %vm1906_vm1, %v1845_v17 }
 0x545   :  { %1886 = vmatmul.bf16.gmra.mxu3 %v1511_v6 }
 0x548   :  { %v1847_v61 = vpop.f32.mrf.mxu3 }
 0x549   :  { %v1848_v9 = vadd.f32 %v3704_v57, %v1847_v61 }
 0x54b   :  { %2009 = vst.msk [vmem:[%s4116_s7 + $0x330] sm:$0xff] %vm1906_vm1, %v1848_v9 }
 0x550   :  { %v1849_v44 = vpop.f32.mrf.mxu3 }
 0x551   :  { %v1850_v22 = vadd.f32 %v3704_v57, %v1849_v44 }
 0x553   :  { %2010 = vst.msk [vmem:[%s4116_s7 + $0x338] sm:$0xff] %vm1906_vm1, %v1850_v22 }
 0x555   :  { %1891 = vmatmul.bf16.gmra.mxu3 %v1512_v28 }
 0x558   :  { %v1852_v42 = vpop.f32.mrf.mxu3 }
 0x559   :  { %v1853_v58 = vadd.f32 %v3704_v57, %v1852_v42 }
 0x55b   :  { %2011 = vst.msk [vmem:[%s4116_s7 + $0x340] sm:$0xff] %vm1906_vm1, %v1853_v58 }
 0x560   :  { %v1854_v5 = vpop.f32.mrf.mxu3 }
 0x561   :  { %v1855_v19 = vadd.f32 %v3704_v57, %v1854_v5 }
 0x563   :  { %2012 = vst.msk [vmem:[%s4116_s7 + $0x348] sm:$0xff] %vm1906_vm1, %v1855_v19 }
 0x565   :  { %1896 = vmatmul.bf16.gmra.mxu3 %v1513_v54 }
 0x568   :  { %v1857_v25 = vpop.f32.mrf.mxu3 }
 0x569   :  { %v1858_v31 = vadd.f32 %v3704_v57, %v1857_v25 }
 0x56b   :  { %2013 = vst.msk [vmem:[%s4116_s7 + $0x350] sm:$0xff] %vm1906_vm1, %v1858_v31 }
 0x570   :  { %v1859_v33 = vpop.f32.mrf.mxu3 }
 0x571   :  { %v1860_v35 = vadd.f32 %v3704_v57, %v1859_v33 }
 0x573   :  { %2014 = vst.msk [vmem:[%s4116_s7 + $0x358] sm:$0xff] %vm1906_vm1, %v1860_v35 }
 0x575   :  { %1901 = vmatmul.bf16.gmra.mxu3 %v1514_v36 }
 0x578   :  { %v1862_v20 = vpop.f32.mrf.mxu3 }
 0x579   :  { %v1863_v34 = vadd.f32 %v3704_v57, %v1862_v20 }
 0x57b   :  { %2015 = vst.msk [vmem:[%s4116_s7 + $0x360] sm:$0xff] %vm1906_vm1, %v1863_v34 }
 0x580   :  { %v1864_v3 = vpop.f32.mrf.mxu3 }
 0x581   :  { %v1865_v18 = vadd.f32 %v3704_v57, %v1864_v3 }
 0x583   :  { %2016 = vst.msk [vmem:[%s4116_s7 + $0x368] sm:$0xff] %vm1906_vm1, %v1865_v18 }
 0x588   :  { %v1867_v37 = vpop.f32.mrf.mxu3 }
 0x589   :  { %v1868_v46 = vadd.f32 %v3704_v57, %v1867_v37 }
 0x58b   :  { %2017 = vst.msk [vmem:[%s4116_s7 + $0x370] sm:$0xff] %vm1906_vm1, %v1868_v46 }
 0x590   :  { %v1869_v48 = vpop.f32.mrf.mxu3 }
 0x591   :  { %v1870_v49 = vadd.f32 %v3704_v57, %v1869_v48 }
 0x593   :  { %2018 = vst.msk [vmem:[%s4116_s7 + $0x378] sm:$0xff] %vm1906_vm1, %v1870_v49 }
 0x598   :  { %v1872_v53 = vpop.f32.mrf.mxu3 }
 0x599   :  { %v1873_v63 = vadd.f32 %v3704_v57, %v1872_v53 }
 0x59b   :  { %2019 = vst.msk [vmem:[%s4116_s7 + $0x380] sm:$0xff] %vm1906_vm1, %v1873_v63 }
 0x5a0   :  { %v1874_v4 = vpop.f32.mrf.mxu3 }
 0x5a1   :  { %v1875_v50 = vadd.f32 %v3704_v57, %v1874_v4 }
 0x5a3   :  { %2020 = vst.msk [vmem:[%s4116_s7 + $0x388] sm:$0xff] %vm1906_vm1, %v1875_v50 }
 0x5a8   :  { %v1877_v51 = vpop.f32.mrf.mxu3 }
 0x5a9   :  { %v1878_v52 = vadd.f32 %v3704_v57, %v1877_v51 }
 0x5ab   :  { %2021 = vst.msk [vmem:[%s4116_s7 + $0x390] sm:$0xff] %vm1906_vm1, %v1878_v52 }
 0x5b0   :  { %v1879_v16 = vpop.f32.mrf.mxu3 }
 0x5b1   :  { %v1880_v6 = vadd.f32 %v3704_v57, %v1879_v16 }
 0x5b3   :  { %2022 = vst.msk [vmem:[%s4116_s7 + $0x398] sm:$0xff] %vm1906_vm1, %v1880_v6 }
 0x5b8   :  { %v1882_v21 = vpop.f32.mrf.mxu3 }
 0x5b9   :  { %v1883_v24 = vadd.f32 %v3704_v57, %v1882_v21 }
 0x5bb   :  { %2023 = vst.msk [vmem:[%s4116_s7 + $0x3a0] sm:$0xff] %vm1906_vm1, %v1883_v24 }
 0x5c0   :  { %v1884_v30 = vpop.f32.mrf.mxu3 }
 0x5c1   :  { %v1885_v55 = vadd.f32 %v3704_v57, %v1884_v30 }
 0x5c3   :  { %2024 = vst.msk [vmem:[%s4116_s7 + $0x3a8] sm:$0xff] %vm1906_vm1, %v1885_v55 }
 0x5c8   :  { %v1887_v56 = vpop.f32.mrf.mxu3 }
 0x5c9   :  { %v1888_v47 = vadd.f32 %v3704_v57, %v1887_v56 }
 0x5cb   :  { %2025 = vst.msk [vmem:[%s4116_s7 + $0x3b0] sm:$0xff] %vm1906_vm1, %v1888_v47 }
 0x5d0   :  { %v1889_v28 = vpop.f32.mrf.mxu3 }
 0x5d1   :  { %v1890_v41 = vadd.f32 %v3704_v57, %v1889_v28 }
 0x5d3   :  { %2026 = vst.msk [vmem:[%s4116_s7 + $0x3b8] sm:$0xff] %vm1906_vm1, %v1890_v41 }
 0x5d8   :  { %v1892_v23 = vpop.f32.mrf.mxu3 }
 0x5d9   :  { %v1893_v27 = vadd.f32 %v3704_v57, %v1892_v23 }
 0x5db   :  { %2027 = vst.msk [vmem:[%s4116_s7 + $0x3c0] sm:$0xff] %vm1906_vm1, %v1893_v27 }
 0x5e0   :  { %v1894_v11 = vpop.f32.mrf.mxu3 }
 0x5e1   :  { %v1895_v43 = vadd.f32 %v3704_v57, %v1894_v11 }
 0x5e3   :  { %2028 = vst.msk [vmem:[%s4116_s7 + $0x3c8] sm:$0xff] %vm1906_vm1, %v1895_v43 }
 0x5e8   :  { %v1897_v62 = vpop.f32.mrf.mxu3 }
 0x5e9   :  { %v1898_v54 = vadd.f32 %v3704_v57, %v1897_v62 }
 0x5eb   :  { %2029 = vst.msk [vmem:[%s4116_s7 + $0x3d0] sm:$0xff] %vm1906_vm1, %v1898_v54 }
 0x5f0   :  { %v1899_v60 = vpop.f32.mrf.mxu3 }
 0x5f1   :  { %v1900_v38 = vadd.f32 %v3704_v57, %v1899_v60 }
 0x5f3   :  { %2030 = vst.msk [vmem:[%s4116_s7 + $0x3d8] sm:$0xff] %vm1906_vm1, %v1900_v38 }
 0x5f8   :  { %v1902_v0 = vpop.f32.mrf.mxu3 }
 0x5f9   :  { %v1903_v2 = vadd.f32 %v3704_v57, %v1902_v0 }
 0x5fb   :  { %2031 = vst.msk [vmem:[%s4116_s7 + $0x3e0] sm:$0xff] %vm1906_vm1, %v1903_v2 }
 0x600   :  { %v1904_v1 = vpop.f32.mrf.mxu3 }

</bundles_post_ra>
